<compile_context>
chip_gen: v6e
topology: v6e:2x2x1
jax: 0.10.0
libtpu: 0.0.40
codegen_flags: <defaults>
</compile_context>

<pallas_src>
import jax
import jax.numpy as jnp
from jax.experimental import pallas as pl
from jax.experimental.pallas import tpu as pltpu


def _down_wt_kernel(x_ref, w_ref, shift_ref, se_ref, so_ref, o_ref):
    # x_ref:     (C, 2*tho, W)    natural NCHW row slab (input rows 2*i*tho ..)
    # w_ref:     (out_ch, 4C)     Haar+BN folded conv weights, column blocks
    #                             ordered by phase [a, c, b, d]
    # shift_ref: (out_ch, 1)      folded conv-bias + BN shift
    # se_ref:    (W, Wo)          0/1 selector, picks even columns (w == 2*wo)
    # so_ref:    (W, Wo)          0/1 selector, picks odd  columns (w == 2*wo+1)
    # o_ref:     (out_ch, tho, Wo)
    tho = o_ref.shape[1]
    w = w_ref[...]
    shift = shift_ref[...]
    se = se_ref[...]
    so = so_ref[...]
    for r in range(tho):                      # static unroll, tho <= 16
        top = x_ref[:, 2 * r, :]              # (C, W)  even input row
        bot = x_ref[:, 2 * r + 1, :]          # (C, W)  odd  input row
        xr = jnp.concatenate([top, bot], axis=0)                        # (2C, W)
        ev = jnp.dot(xr, se, preferred_element_type=jnp.float32)        # (2C, Wo) = [a; c]
        od = jnp.dot(xr, so, preferred_element_type=jnp.float32)        # (2C, Wo) = [b; d]
        x4 = jnp.concatenate([ev, od], axis=0)                          # (4C, Wo) = [a, c, b, d]
        z = jnp.dot(w, x4, preferred_element_type=jnp.float32) + shift  # (out_ch, Wo)
        o_ref[:, r, :] = jnp.maximum(z, 0.0).astype(o_ref.dtype)


def _pick_row_block(Ho, C, W, out_ch, Wo, N):
    """Output rows per grid step: full Ho or a multiple of 8, VMEM-budgeted
    (conservative, v7x-safe), capped to bound kernel unroll, and adjusted so
    there are >= 2 grid steps when possible (v7x has 2 TensorCores)."""
    budget = 10 * 1024 * 1024                       # double-buffered in+out bytes
    w_pad = max(128, -(-W // 128) * 128)            # lane padding of the W axis
    wo_pad = max(128, -(-Wo // 128) * 128)
    per_row = 2 * 4 * (2 * C * w_pad + out_ch * wo_pad)
    cap = max(8, budget // max(per_row, 1))
    cap = min(cap, 16)                              # bound static unroll size
    if Ho <= cap:
        tho = Ho                                    # full extent: always legal
    else:
        tho = (cap // 8) * 8                        # multiple of 8: legal tile
    if N * (-(-Ho // tho)) < 2 and Ho >= 16:        # ensure >= 2 grid steps
        tho = max(8, ((Ho // 2) // 8) * 8)
    return tho


@jax.jit
def down_wt_forward(x, w_conv, b_conv, gamma, beta, r_mean, r_var):
    """x: (N, C, H, W) float32 NCHW.  Returns (N, out_ch, H//2, W//2)."""
    eps = 1e-5
    N, C, H, W = x.shape
    out_ch = w_conv.shape[0]
    assert H % 2 == 0 and W % 2 == 0, "Down_wt kernel assumes even H, W"
    Ho, Wo = H // 2, W // 2

    # ---- fold Haar combine + eval-mode BN into the 1x1 conv weights ----------
    # pytorch_wavelets DWTForward(haar, zero) on the 2x2 block [[a, b], [c, d]]:
    #   yL        = (a + b + c + d)/2
    #   yH band 0 = (a + b - c - d)/2
    #   yH band 1 = (a - b + c - d)/2
    #   yH band 2 = (a - b - c + d)/2
    # and the module concatenates [yL, band0, band1, band2] before the conv.
    w_mat = w_conv.reshape(out_ch, 4 * C)
    w0 = w_mat[:, 0:C]            # weights hitting yL
    w1 = w_mat[:, C:2 * C]        # band 0
    w2 = w_mat[:, 2 * C:3 * C]    # band 1
    w3 = w_mat[:, 3 * C:4 * C]    # band 2
    wa = 0.5 * (w0 + w1 + w2 + w3)   # phase a = (even row, even col)
    wb = 0.5 * (w0 + w1 - w2 - w3)   # phase b = (even row, odd col)
    wc = 0.5 * (w0 - w1 + w2 - w3)   # phase c = (odd row, even col)
    wd = 0.5 * (w0 - w1 - w2 + w3)   # phase d = (odd row, odd col)
    s = gamma / jnp.sqrt(r_var + eps)                                  # BN scale
    # kernel assembles activation rows in [a, c, b, d] block order
    w_fused = jnp.concatenate([wa, wc, wb, wd], axis=1) * s[:, None]   # (out_ch, 4C)
    shift = (beta + (b_conv - r_mean) * s).reshape(out_ch, 1)          # (out_ch, 1)

    # constant 0/1 column selectors: compact even/odd lanes -> Wo lanes via MXU
    iw = jnp.arange(W)[:, None]
    iwo = jnp.arange(Wo)[None, :]
    sel_even = (iw == 2 * iwo).astype(jnp.float32)        # (W, Wo)
    sel_odd = (iw == 2 * iwo + 1).astype(jnp.float32)     # (W, Wo)

    # ---- grid / tiling --------------------------------------------------------
    tho = _pick_row_block(Ho, C, W, out_ch, Wo, N)
    n_rb = -(-Ho // tho)
    x3 = x.reshape(N * C, H, W)          # free reshape of the contiguous NCHW buffer

    out3 = pl.pallas_call(
        _down_wt_kernel,
        out_shape=jax.ShapeDtypeStruct((N * out_ch, Ho, Wo), jnp.float32),
        grid_spec=pltpu.PrefetchScalarGridSpec(
            num_scalar_prefetch=0,
            grid=(N, n_rb),
            in_specs=[
                pl.BlockSpec((C, 2 * tho, W), lambda n, i: (n, i, 0)),   # row slab
                pl.BlockSpec((out_ch, 4 * C), lambda n, i: (0, 0)),      # weights
                pl.BlockSpec((out_ch, 1), lambda n, i: (0, 0)),          # shift
                pl.BlockSpec((W, Wo), lambda n, i: (0, 0)),              # even-col sel
                pl.BlockSpec((W, Wo), lambda n, i: (0, 0)),              # odd-col sel
            ],
            out_specs=pl.BlockSpec((out_ch, tho, Wo), lambda n, i: (n, i, 0)),
        ),
        compiler_params=pltpu.CompilerParams(
            dimension_semantics=("parallel", "parallel")),
    )(x3, w_fused, shift, sel_even, sel_odd)

    # (N*out_ch, Ho, Wo) is already NCHW element order -> free reshape
    return out3.reshape(N, out_ch, Ho, Wo)


def down_wt_reference(x, w_conv, b_conv, gamma, beta, r_mean, r_var):
    """Pure-JAX reference mirroring the PyTorch forward (eval-mode BN)."""
    eps = 1e-5
    N, C, H, W = x.shape
    out_ch = w_conv.shape[0]
    a = x[:, :, 0::2, 0::2]
    b = x[:, :, 0::2, 1::2]
    c = x[:, :, 1::2, 0::2]
    d = x[:, :, 1::2, 1::2]
    ll = 0.5 * (a + b + c + d)
    b0 = 0.5 * (a + b - c - d)
    b1 = 0.5 * (a - b + c - d)
    b2 = 0.5 * (a - b - c + d)
    feat = jnp.concatenate([ll, b0, b1, b2], axis=1)           # (N, 4C, Ho, Wo)
    z = jnp.einsum('nchw,oc->nohw', feat, w_conv.reshape(out_ch, 4 * C))
    z = z + b_conv[None, :, None, None]
    z = (z - r_mean[None, :, None, None]) / jnp.sqrt(r_var + eps)[None, :, None, None]
    z = z * gamma[None, :, None, None] + beta[None, :, None, None]
    return jnp.maximum(z, 0.0)


if __name__ == "__main__":
    key = jax.random.PRNGKey(0)
    k_x, k_w, k_b, k_g, k_bt, k_m, k_v = jax.random.split(key, 7)

    # Small shapes consistent with the module: in_ch=4, out_ch=8, 16x16 input
    N, in_ch, H, W = 2, 4, 16, 16
    out_ch = 8

    x = jax.random.normal(k_x, (N, in_ch, H, W), dtype=jnp.float32)

    # deterministic synthetic parameters (shapes per nn.Conv2d / nn.BatchNorm2d)
    w_conv = jax.random.normal(k_w, (out_ch, 4 * in_ch, 1, 1), jnp.float32) * 0.1
    b_conv = jax.random.normal(k_b, (out_ch,), jnp.float32) * 0.1
    gamma = 1.0 + 0.1 * jax.random.normal(k_g, (out_ch,), jnp.float32)
    beta = 0.1 * jax.random.normal(k_bt, (out_ch,), jnp.float32)
    r_mean = 0.1 * jax.random.normal(k_m, (out_ch,), jnp.float32)
    r_var = 1.0 + 0.1 * jax.random.uniform(k_v, (out_ch,), jnp.float32)

    out = down_wt_forward(x, w_conv, b_conv, gamma, beta, r_mean, r_var)
    out = jax.block_until_ready(out)

    ref = down_wt_reference(x, w_conv, b_conv, gamma, beta, r_mean, r_var)
    assert out.shape == (N, out_ch, H // 2, W // 2), out.shape
    assert jnp.allclose(out, ref, atol=1e-4, rtol=1e-4), \
        float(jnp.max(jnp.abs(out - ref)))

    print("KERNEL_OK")
</pallas_src>

<mosaic_0001>
module attributes {stable_mosaic.version = 11 : i64} {
  func.func @_down_wt_kernel(%arg0: i32, %arg1: i32, %arg2: memref<4x16x16xf32, #tpu.memory_space<vmem>>, %arg3: memref<8x16xf32, #tpu.memory_space<vmem>>, %arg4: memref<8x1xf32, #tpu.memory_space<vmem>>, %arg5: memref<16x8xf32, #tpu.memory_space<vmem>>, %arg6: memref<16x8xf32, #tpu.memory_space<vmem>>, %arg7: memref<8x8x8xf32, #tpu.memory_space<vmem>>) attributes {dimension_semantics = [#tpu.dimension_semantics<parallel>, #tpu.dimension_semantics<parallel>], iteration_bounds = array<i64: 2, 1>, scalar_prefetch = 0 : i64, scratch_operands = 0 : i64, tpu.core_type = #tpu.core_type<tc>, window_params = [{transform_indices = @transform_0, window_bounds = array<i64: 4, 16, 16>}, {pipeline_mode = #tpu.pipeline_mode<synchronous>, transform_indices = @transform_1, window_bounds = array<i64: 8, 16>}, {pipeline_mode = #tpu.pipeline_mode<synchronous>, transform_indices = @transform_2, window_bounds = array<i64: 8, 1>}, {pipeline_mode = #tpu.pipeline_mode<synchronous>, transform_indices = @transform_3, window_bounds = array<i64: 16, 8>}, {pipeline_mode = #tpu.pipeline_mode<synchronous>, transform_indices = @transform_4, window_bounds = array<i64: 16, 8>}, {transform_indices = @transform_5, window_bounds = array<i64: 8, 8, 8>}]} {
    %c0 = arith.constant 0 : index
    %c0_0 = arith.constant 0 : index
    %0 = vector.load %arg3[%c0, %c0_0] : memref<8x16xf32, #tpu.memory_space<vmem>>, vector<8x16xf32>
    %c0_1 = arith.constant 0 : index
    %c0_2 = arith.constant 0 : index
    %1 = vector.load %arg4[%c0_1, %c0_2] : memref<8x1xf32, #tpu.memory_space<vmem>>, vector<8x1xf32>
    %c0_3 = arith.constant 0 : index
    %c0_4 = arith.constant 0 : index
    %2 = vector.load %arg5[%c0_3, %c0_4] : memref<16x8xf32, #tpu.memory_space<vmem>>, vector<16x8xf32>
    %c0_5 = arith.constant 0 : index
    %c0_6 = arith.constant 0 : index
    %3 = vector.load %arg6[%c0_5, %c0_6] : memref<16x8xf32, #tpu.memory_space<vmem>>, vector<16x8xf32>
    %c0_7 = arith.constant 0 : index
    %c0_8 = arith.constant 0 : index
    %c0_9 = arith.constant 0 : index
    %4 = vector.load %arg2[%c0_7, %c0_8, %c0_9] : memref<4x16x16xf32, #tpu.memory_space<vmem>>, vector<4x1x16xf32>
    %5 = vector.shape_cast %4 : vector<4x1x16xf32> to vector<4x16xf32>
    %c0_10 = arith.constant 0 : index
    %c1 = arith.constant 1 : index
    %c0_11 = arith.constant 0 : index
    %6 = vector.load %arg2[%c0_10, %c1, %c0_11] : memref<4x16x16xf32, #tpu.memory_space<vmem>>, vector<4x1x16xf32>
    %7 = vector.shape_cast %6 : vector<4x1x16xf32> to vector<4x16xf32>
    %8 = tpu.concatenate %5, %7 in 0 : vector<4x16xf32>, vector<4x16xf32> -> vector<8x16xf32>
    %cst = arith.constant dense<0.000000e+00> : vector<8x8xf32>
    %9 = tpu.matmul %8, %2, %cst {dimension_numbers = #tpu.dot_dimension_numbers<[1], [0], [0], [1], [0, 0, 1, 1], [], []>} : vector<8x16xf32>, vector<16x8xf32>, vector<8x8xf32> -> vector<8x8xf32>
    %cst_12 = arith.constant dense<0.000000e+00> : vector<8x8xf32>
    %10 = tpu.matmul %8, %3, %cst_12 {dimension_numbers = #tpu.dot_dimension_numbers<[1], [0], [0], [1], [0, 0, 1, 1], [], []>} : vector<8x16xf32>, vector<16x8xf32>, vector<8x8xf32> -> vector<8x8xf32>
    %11 = tpu.concatenate %9, %10 in 0 : vector<8x8xf32>, vector<8x8xf32> -> vector<16x8xf32>
    %cst_13 = arith.constant dense<0.000000e+00> : vector<8x8xf32>
    %12 = tpu.matmul %0, %11, %cst_13 {dimension_numbers = #tpu.dot_dimension_numbers<[1], [0], [0], [1], [0, 0, 1, 1], [], []>} : vector<8x16xf32>, vector<16x8xf32>, vector<8x8xf32> -> vector<8x8xf32>
    %13 = vector.broadcast %1 : vector<8x1xf32> to vector<8x8xf32>
    %14 = arith.addf %12, %13 : vector<8x8xf32>
    %cst_14 = arith.constant 0.000000e+00 : f32
    %15 = vector.broadcast %cst_14 : f32 to vector<8x8xf32>
    %16 = arith.maximumf %14, %15 : vector<8x8xf32>
    %c0_15 = arith.constant 0 : index
    %c0_16 = arith.constant 0 : index
    %c0_17 = arith.constant 0 : index
    %17 = vector.load %arg7[%c0_15, %c0_16, %c0_17] : memref<8x8x8xf32, #tpu.memory_space<vmem>>, vector<8x1x8xf32>
    %18 = vector.shape_cast %17 : vector<8x1x8xf32> to vector<8x8xf32>
    %19 = vector.shape_cast %16 : vector<8x8xf32> to vector<8x1x8xf32>
    tpu.vector_store %arg7[%c0_15, %c0_16, %c0_17], %19 {strides = array<i32>} : memref<8x8x8xf32, #tpu.memory_space<vmem>>, vector<8x1x8xf32>,
    %c0_18 = arith.constant 0 : index
    %c2 = arith.constant 2 : index
    %c0_19 = arith.constant 0 : index
    %20 = vector.load %arg2[%c0_18, %c2, %c0_19] : memref<4x16x16xf32, #tpu.memory_space<vmem>>, vector<4x1x16xf32>
    %21 = vector.shape_cast %20 : vector<4x1x16xf32> to vector<4x16xf32>
    %c0_20 = arith.constant 0 : index
    %c3 = arith.constant 3 : index
    %c0_21 = arith.constant 0 : index
    %22 = vector.load %arg2[%c0_20, %c3, %c0_21] : memref<4x16x16xf32, #tpu.memory_space<vmem>>, vector<4x1x16xf32>
    %23 = vector.shape_cast %22 : vector<4x1x16xf32> to vector<4x16xf32>
    %24 = tpu.concatenate %21, %23 in 0 : vector<4x16xf32>, vector<4x16xf32> -> vector<8x16xf32>
    %cst_22 = arith.constant dense<0.000000e+00> : vector<8x8xf32>
    %25 = tpu.matmul %24, %2, %cst_22 {dimension_numbers = #tpu.dot_dimension_numbers<[1], [0], [0], [1], [0, 0, 1, 1], [], []>} : vector<8x16xf32>, vector<16x8xf32>, vector<8x8xf32> -> vector<8x8xf32>
    %cst_23 = arith.constant dense<0.000000e+00> : vector<8x8xf32>
    %26 = tpu.matmul %24, %3, %cst_23 {dimension_numbers = #tpu.dot_dimension_numbers<[1], [0], [0], [1], [0, 0, 1, 1], [], []>} : vector<8x16xf32>, vector<16x8xf32>, vector<8x8xf32> -> vector<8x8xf32>
    %27 = tpu.concatenate %25, %26 in 0 : vector<8x8xf32>, vector<8x8xf32> -> vector<16x8xf32>
    %cst_24 = arith.constant dense<0.000000e+00> : vector<8x8xf32>
    %28 = tpu.matmul %0, %27, %cst_24 {dimension_numbers = #tpu.dot_dimension_numbers<[1], [0], [0], [1], [0, 0, 1, 1], [], []>} : vector<8x16xf32>, vector<16x8xf32>, vector<8x8xf32> -> vector<8x8xf32>
    %29 = vector.broadcast %1 : vector<8x1xf32> to vector<8x8xf32>
    %30 = arith.addf %28, %29 : vector<8x8xf32>
    %cst_25 = arith.constant 0.000000e+00 : f32
    %31 = vector.broadcast %cst_25 : f32 to vector<8x8xf32>
    %32 = arith.maximumf %30, %31 : vector<8x8xf32>
    %c0_26 = arith.constant 0 : index
    %c1_27 = arith.constant 1 : index
    %c0_28 = arith.constant 0 : index
    %33 = vector.load %arg7[%c0_26, %c1_27, %c0_28] : memref<8x8x8xf32, #tpu.memory_space<vmem>>, vector<8x1x8xf32>
    %34 = vector.shape_cast %33 : vector<8x1x8xf32> to vector<8x8xf32>
    %35 = vector.shape_cast %32 : vector<8x8xf32> to vector<8x1x8xf32>
    tpu.vector_store %arg7[%c0_26, %c1_27, %c0_28], %35 {strides = array<i32>} : memref<8x8x8xf32, #tpu.memory_space<vmem>>, vector<8x1x8xf32>,
    %c0_29 = arith.constant 0 : index
    %c4 = arith.constant 4 : index
    %c0_30 = arith.constant 0 : index
    %36 = vector.load %arg2[%c0_29, %c4, %c0_30] : memref<4x16x16xf32, #tpu.memory_space<vmem>>, vector<4x1x16xf32>
    %37 = vector.shape_cast %36 : vector<4x1x16xf32> to vector<4x16xf32>
    %c0_31 = arith.constant 0 : index
    %c5 = arith.constant 5 : index
    %c0_32 = arith.constant 0 : index
    %38 = vector.load %arg2[%c0_31, %c5, %c0_32] : memref<4x16x16xf32, #tpu.memory_space<vmem>>, vector<4x1x16xf32>
    %39 = vector.shape_cast %38 : vector<4x1x16xf32> to vector<4x16xf32>
    %40 = tpu.concatenate %37, %39 in 0 : vector<4x16xf32>, vector<4x16xf32> -> vector<8x16xf32>
    %cst_33 = arith.constant dense<0.000000e+00> : vector<8x8xf32>
    %41 = tpu.matmul %40, %2, %cst_33 {dimension_numbers = #tpu.dot_dimension_numbers<[1], [0], [0], [1], [0, 0, 1, 1], [], []>} : vector<8x16xf32>, vector<16x8xf32>, vector<8x8xf32> -> vector<8x8xf32>
    %cst_34 = arith.constant dense<0.000000e+00> : vector<8x8xf32>
    %42 = tpu.matmul %40, %3, %cst_34 {dimension_numbers = #tpu.dot_dimension_numbers<[1], [0], [0], [1], [0, 0, 1, 1], [], []>} : vector<8x16xf32>, vector<16x8xf32>, vector<8x8xf32> -> vector<8x8xf32>
    %43 = tpu.concatenate %41, %42 in 0 : vector<8x8xf32>, vector<8x8xf32> -> vector<16x8xf32>
    %cst_35 = arith.constant dense<0.000000e+00> : vector<8x8xf32>
    %44 = tpu.matmul %0, %43, %cst_35 {dimension_numbers = #tpu.dot_dimension_numbers<[1], [0], [0], [1], [0, 0, 1, 1], [], []>} : vector<8x16xf32>, vector<16x8xf32>, vector<8x8xf32> -> vector<8x8xf32>
    %45 = vector.broadcast %1 : vector<8x1xf32> to vector<8x8xf32>
    %46 = arith.addf %44, %45 : vector<8x8xf32>
    %cst_36 = arith.constant 0.000000e+00 : f32
    %47 = vector.broadcast %cst_36 : f32 to vector<8x8xf32>
    %48 = arith.maximumf %46, %47 : vector<8x8xf32>
    %c0_37 = arith.constant 0 : index
    %c2_38 = arith.constant 2 : index
    %c0_39 = arith.constant 0 : index
    %49 = vector.load %arg7[%c0_37, %c2_38, %c0_39] : memref<8x8x8xf32, #tpu.memory_space<vmem>>, vector<8x1x8xf32>
    %50 = vector.shape_cast %49 : vector<8x1x8xf32> to vector<8x8xf32>
    %51 = vector.shape_cast %48 : vector<8x8xf32> to vector<8x1x8xf32>
    tpu.vector_store %arg7[%c0_37, %c2_38, %c0_39], %51 {strides = array<i32>} : memref<8x8x8xf32, #tpu.memory_space<vmem>>, vector<8x1x8xf32>,
    %c0_40 = arith.constant 0 : index
    %c6 = arith.constant 6 : index
    %c0_41 = arith.constant 0 : index
    %52 = vector.load %arg2[%c0_40, %c6, %c0_41] : memref<4x16x16xf32, #tpu.memory_space<vmem>>, vector<4x1x16xf32>
    %53 = vector.shape_cast %52 : vector<4x1x16xf32> to vector<4x16xf32>
    %c0_42 = arith.constant 0 : index
    %c7 = arith.constant 7 : index
    %c0_43 = arith.constant 0 : index
    %54 = vector.load %arg2[%c0_42, %c7, %c0_43] : memref<4x16x16xf32, #tpu.memory_space<vmem>>, vector<4x1x16xf32>
    %55 = vector.shape_cast %54 : vector<4x1x16xf32> to vector<4x16xf32>
    %56 = tpu.concatenate %53, %55 in 0 : vector<4x16xf32>, vector<4x16xf32> -> vector<8x16xf32>
    %cst_44 = arith.constant dense<0.000000e+00> : vector<8x8xf32>
    %57 = tpu.matmul %56, %2, %cst_44 {dimension_numbers = #tpu.dot_dimension_numbers<[1], [0], [0], [1], [0, 0, 1, 1], [], []>} : vector<8x16xf32>, vector<16x8xf32>, vector<8x8xf32> -> vector<8x8xf32>
    %cst_45 = arith.constant dense<0.000000e+00> : vector<8x8xf32>
    %58 = tpu.matmul %56, %3, %cst_45 {dimension_numbers = #tpu.dot_dimension_numbers<[1], [0], [0], [1], [0, 0, 1, 1], [], []>} : vector<8x16xf32>, vector<16x8xf32>, vector<8x8xf32> -> vector<8x8xf32>
    %59 = tpu.concatenate %57, %58 in 0 : vector<8x8xf32>, vector<8x8xf32> -> vector<16x8xf32>
    %cst_46 = arith.constant dense<0.000000e+00> : vector<8x8xf32>
    %60 = tpu.matmul %0, %59, %cst_46 {dimension_numbers = #tpu.dot_dimension_numbers<[1], [0], [0], [1], [0, 0, 1, 1], [], []>} : vector<8x16xf32>, vector<16x8xf32>, vector<8x8xf32> -> vector<8x8xf32>
    %61 = vector.broadcast %1 : vector<8x1xf32> to vector<8x8xf32>
    %62 = arith.addf %60, %61 : vector<8x8xf32>
    %cst_47 = arith.constant 0.000000e+00 : f32
    %63 = vector.broadcast %cst_47 : f32 to vector<8x8xf32>
    %64 = arith.maximumf %62, %63 : vector<8x8xf32>
    %c0_48 = arith.constant 0 : index
    %c3_49 = arith.constant 3 : index
    %c0_50 = arith.constant 0 : index
    %65 = vector.load %arg7[%c0_48, %c3_49, %c0_50] : memref<8x8x8xf32, #tpu.memory_space<vmem>>, vector<8x1x8xf32>
    %66 = vector.shape_cast %65 : vector<8x1x8xf32> to vector<8x8xf32>
    %67 = vector.shape_cast %64 : vector<8x8xf32> to vector<8x1x8xf32>
    tpu.vector_store %arg7[%c0_48, %c3_49, %c0_50], %67 {strides = array<i32>} : memref<8x8x8xf32, #tpu.memory_space<vmem>>, vector<8x1x8xf32>,
    %c0_51 = arith.constant 0 : index
    %c8 = arith.constant 8 : index
    %c0_52 = arith.constant 0 : index
    %68 = vector.load %arg2[%c0_51, %c8, %c0_52] : memref<4x16x16xf32, #tpu.memory_space<vmem>>, vector<4x1x16xf32>
    %69 = vector.shape_cast %68 : vector<4x1x16xf32> to vector<4x16xf32>
    %c0_53 = arith.constant 0 : index
    %c9 = arith.constant 9 : index
    %c0_54 = arith.constant 0 : index
    %70 = vector.load %arg2[%c0_53, %c9, %c0_54] : memref<4x16x16xf32, #tpu.memory_space<vmem>>, vector<4x1x16xf32>
    %71 = vector.shape_cast %70 : vector<4x1x16xf32> to vector<4x16xf32>
    %72 = tpu.concatenate %69, %71 in 0 : vector<4x16xf32>, vector<4x16xf32> -> vector<8x16xf32>
    %cst_55 = arith.constant dense<0.000000e+00> : vector<8x8xf32>
    %73 = tpu.matmul %72, %2, %cst_55 {dimension_numbers = #tpu.dot_dimension_numbers<[1], [0], [0], [1], [0, 0, 1, 1], [], []>} : vector<8x16xf32>, vector<16x8xf32>, vector<8x8xf32> -> vector<8x8xf32>
    %cst_56 = arith.constant dense<0.000000e+00> : vector<8x8xf32>
    %74 = tpu.matmul %72, %3, %cst_56 {dimension_numbers = #tpu.dot_dimension_numbers<[1], [0], [0], [1], [0, 0, 1, 1], [], []>} : vector<8x16xf32>, vector<16x8xf32>, vector<8x8xf32> -> vector<8x8xf32>
    %75 = tpu.concatenate %73, %74 in 0 : vector<8x8xf32>, vector<8x8xf32> -> vector<16x8xf32>
    %cst_57 = arith.constant dense<0.000000e+00> : vector<8x8xf32>
    %76 = tpu.matmul %0, %75, %cst_57 {dimension_numbers = #tpu.dot_dimension_numbers<[1], [0], [0], [1], [0, 0, 1, 1], [], []>} : vector<8x16xf32>, vector<16x8xf32>, vector<8x8xf32> -> vector<8x8xf32>
    %77 = vector.broadcast %1 : vector<8x1xf32> to vector<8x8xf32>
    %78 = arith.addf %76, %77 : vector<8x8xf32>
    %cst_58 = arith.constant 0.000000e+00 : f32
    %79 = vector.broadcast %cst_58 : f32 to vector<8x8xf32>
    %80 = arith.maximumf %78, %79 : vector<8x8xf32>
    %c0_59 = arith.constant 0 : index
    %c4_60 = arith.constant 4 : index
    %c0_61 = arith.constant 0 : index
    %81 = vector.load %arg7[%c0_59, %c4_60, %c0_61] : memref<8x8x8xf32, #tpu.memory_space<vmem>>, vector<8x1x8xf32>
    %82 = vector.shape_cast %81 : vector<8x1x8xf32> to vector<8x8xf32>
    %83 = vector.shape_cast %80 : vector<8x8xf32> to vector<8x1x8xf32>
    tpu.vector_store %arg7[%c0_59, %c4_60, %c0_61], %83 {strides = array<i32>} : memref<8x8x8xf32, #tpu.memory_space<vmem>>, vector<8x1x8xf32>,
    %c0_62 = arith.constant 0 : index
    %c10 = arith.constant 10 : index
    %c0_63 = arith.constant 0 : index
    %84 = vector.load %arg2[%c0_62, %c10, %c0_63] : memref<4x16x16xf32, #tpu.memory_space<vmem>>, vector<4x1x16xf32>
    %85 = vector.shape_cast %84 : vector<4x1x16xf32> to vector<4x16xf32>
    %c0_64 = arith.constant 0 : index
    %c11 = arith.constant 11 : index
    %c0_65 = arith.constant 0 : index
    %86 = vector.load %arg2[%c0_64, %c11, %c0_65] : memref<4x16x16xf32, #tpu.memory_space<vmem>>, vector<4x1x16xf32>
    %87 = vector.shape_cast %86 : vector<4x1x16xf32> to vector<4x16xf32>
    %88 = tpu.concatenate %85, %87 in 0 : vector<4x16xf32>, vector<4x16xf32> -> vector<8x16xf32>
    %cst_66 = arith.constant dense<0.000000e+00> : vector<8x8xf32>
    %89 = tpu.matmul %88, %2, %cst_66 {dimension_numbers = #tpu.dot_dimension_numbers<[1], [0], [0], [1], [0, 0, 1, 1], [], []>} : vector<8x16xf32>, vector<16x8xf32>, vector<8x8xf32> -> vector<8x8xf32>
    %cst_67 = arith.constant dense<0.000000e+00> : vector<8x8xf32>
    %90 = tpu.matmul %88, %3, %cst_67 {dimension_numbers = #tpu.dot_dimension_numbers<[1], [0], [0], [1], [0, 0, 1, 1], [], []>} : vector<8x16xf32>, vector<16x8xf32>, vector<8x8xf32> -> vector<8x8xf32>
    %91 = tpu.concatenate %89, %90 in 0 : vector<8x8xf32>, vector<8x8xf32> -> vector<16x8xf32>
    %cst_68 = arith.constant dense<0.000000e+00> : vector<8x8xf32>
    %92 = tpu.matmul %0, %91, %cst_68 {dimension_numbers = #tpu.dot_dimension_numbers<[1], [0], [0], [1], [0, 0, 1, 1], [], []>} : vector<8x16xf32>, vector<16x8xf32>, vector<8x8xf32> -> vector<8x8xf32>
    %93 = vector.broadcast %1 : vector<8x1xf32> to vector<8x8xf32>
    %94 = arith.addf %92, %93 : vector<8x8xf32>
    %cst_69 = arith.constant 0.000000e+00 : f32
    %95 = vector.broadcast %cst_69 : f32 to vector<8x8xf32>
    %96 = arith.maximumf %94, %95 : vector<8x8xf32>
    %c0_70 = arith.constant 0 : index
    %c5_71 = arith.constant 5 : index
    %c0_72 = arith.constant 0 : index
    %97 = vector.load %arg7[%c0_70, %c5_71, %c0_72] : memref<8x8x8xf32, #tpu.memory_space<vmem>>, vector<8x1x8xf32>
    %98 = vector.shape_cast %97 : vector<8x1x8xf32> to vector<8x8xf32>
    %99 = vector.shape_cast %96 : vector<8x8xf32> to vector<8x1x8xf32>
    tpu.vector_store %arg7[%c0_70, %c5_71, %c0_72], %99 {strides = array<i32>} : memref<8x8x8xf32, #tpu.memory_space<vmem>>, vector<8x1x8xf32>,
    %c0_73 = arith.constant 0 : index
    %c12 = arith.constant 12 : index
    %c0_74 = arith.constant 0 : index
    %100 = vector.load %arg2[%c0_73, %c12, %c0_74] : memref<4x16x16xf32, #tpu.memory_space<vmem>>, vector<4x1x16xf32>
    %101 = vector.shape_cast %100 : vector<4x1x16xf32> to vector<4x16xf32>
    %c0_75 = arith.constant 0 : index
    %c13 = arith.constant 13 : index
    %c0_76 = arith.constant 0 : index
    %102 = vector.load %arg2[%c0_75, %c13, %c0_76] : memref<4x16x16xf32, #tpu.memory_space<vmem>>, vector<4x1x16xf32>
    %103 = vector.shape_cast %102 : vector<4x1x16xf32> to vector<4x16xf32>
    %104 = tpu.concatenate %101, %103 in 0 : vector<4x16xf32>, vector<4x16xf32> -> vector<8x16xf32>
    %cst_77 = arith.constant dense<0.000000e+00> : vector<8x8xf32>
    %105 = tpu.matmul %104, %2, %cst_77 {dimension_numbers = #tpu.dot_dimension_numbers<[1], [0], [0], [1], [0, 0, 1, 1], [], []>} : vector<8x16xf32>, vector<16x8xf32>, vector<8x8xf32> -> vector<8x8xf32>
    %cst_78 = arith.constant dense<0.000000e+00> : vector<8x8xf32>
    %106 = tpu.matmul %104, %3, %cst_78 {dimension_numbers = #tpu.dot_dimension_numbers<[1], [0], [0], [1], [0, 0, 1, 1], [], []>} : vector<8x16xf32>, vector<16x8xf32>, vector<8x8xf32> -> vector<8x8xf32>
    %107 = tpu.concatenate %105, %106 in 0 : vector<8x8xf32>, vector<8x8xf32> -> vector<16x8xf32>
    %cst_79 = arith.constant dense<0.000000e+00> : vector<8x8xf32>
    %108 = tpu.matmul %0, %107, %cst_79 {dimension_numbers = #tpu.dot_dimension_numbers<[1], [0], [0], [1], [0, 0, 1, 1], [], []>} : vector<8x16xf32>, vector<16x8xf32>, vector<8x8xf32> -> vector<8x8xf32>
    %109 = vector.broadcast %1 : vector<8x1xf32> to vector<8x8xf32>
    %110 = arith.addf %108, %109 : vector<8x8xf32>
    %cst_80 = arith.constant 0.000000e+00 : f32
    %111 = vector.broadcast %cst_80 : f32 to vector<8x8xf32>
    %112 = arith.maximumf %110, %111 : vector<8x8xf32>
    %c0_81 = arith.constant 0 : index
    %c6_82 = arith.constant 6 : index
    %c0_83 = arith.constant 0 : index
    %113 = vector.load %arg7[%c0_81, %c6_82, %c0_83] : memref<8x8x8xf32, #tpu.memory_space<vmem>>, vector<8x1x8xf32>
    %114 = vector.shape_cast %113 : vector<8x1x8xf32> to vector<8x8xf32>
    %115 = vector.shape_cast %112 : vector<8x8xf32> to vector<8x1x8xf32>
    tpu.vector_store %arg7[%c0_81, %c6_82, %c0_83], %115 {strides = array<i32>} : memref<8x8x8xf32, #tpu.memory_space<vmem>>, vector<8x1x8xf32>,
    %c0_84 = arith.constant 0 : index
    %c14 = arith.constant 14 : index
    %c0_85 = arith.constant 0 : index
    %116 = vector.load %arg2[%c0_84, %c14, %c0_85] : memref<4x16x16xf32, #tpu.memory_space<vmem>>, vector<4x1x16xf32>
    %117 = vector.shape_cast %116 : vector<4x1x16xf32> to vector<4x16xf32>
    %c0_86 = arith.constant 0 : index
    %c15 = arith.constant 15 : index
    %c0_87 = arith.constant 0 : index
    %118 = vector.load %arg2[%c0_86, %c15, %c0_87] : memref<4x16x16xf32, #tpu.memory_space<vmem>>, vector<4x1x16xf32>
    %119 = vector.shape_cast %118 : vector<4x1x16xf32> to vector<4x16xf32>
    %120 = tpu.concatenate %117, %119 in 0 : vector<4x16xf32>, vector<4x16xf32> -> vector<8x16xf32>
    %cst_88 = arith.constant dense<0.000000e+00> : vector<8x8xf32>
    %121 = tpu.matmul %120, %2, %cst_88 {dimension_numbers = #tpu.dot_dimension_numbers<[1], [0], [0], [1], [0, 0, 1, 1], [], []>} : vector<8x16xf32>, vector<16x8xf32>, vector<8x8xf32> -> vector<8x8xf32>
    %cst_89 = arith.constant dense<0.000000e+00> : vector<8x8xf32>
    %122 = tpu.matmul %120, %3, %cst_89 {dimension_numbers = #tpu.dot_dimension_numbers<[1], [0], [0], [1], [0, 0, 1, 1], [], []>} : vector<8x16xf32>, vector<16x8xf32>, vector<8x8xf32> -> vector<8x8xf32>
    %123 = tpu.concatenate %121, %122 in 0 : vector<8x8xf32>, vector<8x8xf32> -> vector<16x8xf32>
    %cst_90 = arith.constant dense<0.000000e+00> : vector<8x8xf32>
    %124 = tpu.matmul %0, %123, %cst_90 {dimension_numbers = #tpu.dot_dimension_numbers<[1], [0], [0], [1], [0, 0, 1, 1], [], []>} : vector<8x16xf32>, vector<16x8xf32>, vector<8x8xf32> -> vector<8x8xf32>
    %125 = vector.broadcast %1 : vector<8x1xf32> to vector<8x8xf32>
    %126 = arith.addf %124, %125 : vector<8x8xf32>
    %cst_91 = arith.constant 0.000000e+00 : f32
    %127 = vector.broadcast %cst_91 : f32 to vector<8x8xf32>
    %128 = arith.maximumf %126, %127 : vector<8x8xf32>
    %c0_92 = arith.constant 0 : index
    %c7_93 = arith.constant 7 : index
    %c0_94 = arith.constant 0 : index
    %129 = vector.load %arg7[%c0_92, %c7_93, %c0_94] : memref<8x8x8xf32, #tpu.memory_space<vmem>>, vector<8x1x8xf32>
    %130 = vector.shape_cast %129 : vector<8x1x8xf32> to vector<8x8xf32>
    %131 = vector.shape_cast %128 : vector<8x8xf32> to vector<8x1x8xf32>
    tpu.vector_store %arg7[%c0_92, %c7_93, %c0_94], %131 {strides = array<i32>} : memref<8x8x8xf32, #tpu.memory_space<vmem>>, vector<8x1x8xf32>,
    return
  }
  func.func @transform_0(%arg0: i32, %arg1: i32) -> (i32, i32, i32) {
    %c0_i32 = arith.constant 0 : i32
    %c0_i32_0 = arith.constant 0 : i32
    return %arg0, %arg1, %c0_i32 : i32, i32, i32
  }
  func.func @transform_1(%arg0: i32, %arg1: i32) -> (i32, i32) {
    %c0_i32 = arith.constant 0 : i32
    %c0_i32_0 = arith.constant 0 : i32
    %c0_i32_1 = arith.constant 0 : i32
    return %c0_i32, %c0_i32_0 : i32, i32
  }
  func.func @transform_2(%arg0: i32, %arg1: i32) -> (i32, i32) {
    %c0_i32 = arith.constant 0 : i32
    %c0_i32_0 = arith.constant 0 : i32
    %c0_i32_1 = arith.constant 0 : i32
    return %c0_i32, %c0_i32_0 : i32, i32
  }
  func.func @transform_3(%arg0: i32, %arg1: i32) -> (i32, i32) {
    %c0_i32 = arith.constant 0 : i32
    %c0_i32_0 = arith.constant 0 : i32
    %c0_i32_1 = arith.constant 0 : i32
    return %c0_i32, %c0_i32_0 : i32, i32
  }
  func.func @transform_4(%arg0: i32, %arg1: i32) -> (i32, i32) {
    %c0_i32 = arith.constant 0 : i32
    %c0_i32_0 = arith.constant 0 : i32
    %c0_i32_1 = arith.constant 0 : i32
    return %c0_i32, %c0_i32_0 : i32, i32
  }
  func.func @transform_5(%arg0: i32, %arg1: i32) -> (i32, i32, i32) {
    %c0_i32 = arith.constant 0 : i32
    %c0_i32_0 = arith.constant 0 : i32
    return %arg0, %arg1, %c0_i32 : i32, i32, i32
  }
}

</mosaic_0001>

<bundles_post_ra>
// kernel: down_wt_forward.1
= control target key start
LH: loop header
LB: loop body
LE: loop exit
PB: predicated region body
PF: predicated region fallthrough
CT: control target
= control target key end

     0   :  { %10 = vsyncpa [#allocation3], 0  ;;  %s3946_s0 = inlined_call_operand.vmem [shape: f32[8,16,16], index: 0, kind: input, shape index: {}]   ;;  %s3947_s1 = inlined_call_operand.vmem [shape: f32[8,16], index: 1, kind: input, shape index: {}]   ;;  %s3948_s2 = inlined_call_operand.vmem [shape: f32[8,1], index: 2, kind: input, shape index: {}]   ;;  %s3949_s3 = inlined_call_operand.vmem [shape: f32[16,8], index: 3, kind: input, shape index: {}]   ;;  %s3950_s4 = inlined_call_operand.vmem [shape: f32[16,8], index: 4, kind: input, shape index: {}]   ;;  %s3951_s5 = inlined_call_operand.hbm [shape: f32[16,8,8], index: 5, kind: output, shape index: {}]  }
   0x1   :  { %12 = vsyncpa [#allocation3 + $0x1], 0  ;;  %s3328_s18 = smov 0   ;;  %s3330_s19 = smov 0  }
   0x2   :  { %s3332_s20 = smov 0   ;;  %s3334_s21 = smov 0  }
   0x3   :  { %s3336_s22 = smov 0   ;;  %s3338_s23 = smov 0  }
   0x4 LB: > { %s2871_s24 = sadd.s32 4294967295, %s3289_s23   ;;  %s2872_s25 = sadd.s32 4294967294, %s3289_s23   ;;  %s3289_s23 = sphi %s3338_s23, %s18_s23   ;;  %s3285_s22 = sphi %s3336_s22, %s3958_s22   ;;  %s3281_s21 = sphi %s3334_s21, %s3957_s21   ;;  %s3277_s20 = sphi %s3332_s20, %s3956_s20   ;;  %s3273_s19 = sphi %s3330_s19, %s3955_s19   ;;  %s3269_s18 = sphi %s3328_s18, %s3954_s18  }
   0x5   : > { %s30_s26 = sadd.s32 1, %s3285_s22  ;;  %s151_s27 = sadd.s32 1, %s3277_s20 }
   0x6   : > { %p32_p0 = scmp.ge.s32.totalorder %s30_s26, 2  ;;  %p161_p1 = scmp.ne.s32.totalorder %s3277_s20, %s3273_s19 }
   0x7   : > { %p162_p2 = scmp.eq.s32.totalorder %s2871_s24, 1  ;;  %p167_p3 = scmp.ne.s32.totalorder %s3273_s19, %s3269_s18 }
   0x8   : > { %s3960_s26 = smov (%p32_p0, %s30_s26), 0  ;;  %p168_p5 = scmp.eq.s32.totalorder %s2872_s25, 1 }
   0x9   : > { %p3368_p4 = por %p162_p2, %p161_p1  ;;  %s146_s29 = ssub.s32 %s3285_s22, %s3960_s26 }
   0xa   : > { %p2875_p6 = scmp.ge.s32.totalorder %s3289_s23, 1  ;;  %p149_p7 = scmp.eq.s32.totalorder %s146_s29, 0 }
   0xb   : > { %p3375_p8 = por %p168_p5, %p167_p3  ;;  %p213_p9 = scmp.lt.s32.totalorder %s3289_s23, 3 }
   0xc   : > { %s3381_s6 = scalar_select %p149_p7, %s3277_s20, %s151_s27  }
   0xd   : > { %p214_p10 = pnand %p2875_p6, %p213_p9 }
   0xe   : > { %s2877_s11 = sshll.u32 (!%p214_p10), %s3281_s21, 2  ;;  %s243_s9 = sand.u32 (!%p214_p10), 1, %s3273_s19  }
   0xf   : > { %217 = sbr.rel (%p214_p10) target bundleno = 1852 (0x73c), region = 40  ;;  %p248_p11 = scmp.lt.s32.totalorder (!%p214_p10), %s2877_s11, 7 }
  0x10   : > { %s2876_s10 = sshll.u32 (!%p214_p10), %s243_s9, 6  ;;  %s2910_s12 = sshll.u32 (!%p214_p10), %s3281_s21, 10 }
  0x11   : > { %s3901_s21 = scalar_lea.sflag (!%p214_p10), [#allocation3], %s243_s9  ;;  %s3295_s24 = smov (!%p214_p10), [#allocation2]  }
  0x14   : > { %v3386_v0 = vld [vmem:[%s3949_s3 + $0x8] sm:$0xff]  ;;  %v3291_v2 = vmov 0.0   ;;  %v3399_v3 = vld [vmem:[%s3949_s3] sm:$0xff]  ;;  %s3962_s11 = smov (!%p248_p11, %s2877_s11), 7  ;;  %vm3292_vm0 = vmmov 0   ;;  %vm278_vm1 = vcmask 1041409  }
  0x15   : > { %v3391_v1 = vld [vmem:[%s3950_s4 + $0x8] sm:$0xff]  ;;  %2983 = vmatprep.subr.mxu0 %v3291_v2  ;;  %2990 = vmatprep.subr.mxu1 %v3291_v2  ;;  %v3406_v4 = vld [vmem:[%s3950_s4] sm:$0xff]  ;;  %s2909_s16 = sshll.u32 %s3962_s11, 4  ;;  %vm281_vm2 = vcmask 1042434   ;;  %vm284_vm3 = vcmask 1043459   ;;  %vm293_vm4 = vcmask 1045509  }
  0x16   : > { %2984 = vmatpush3.msra.mxu0 %v3386_v0  ;;  %2991 = vmatpush3.msra.mxu1 %v3391_v1  ;;  %s3419_s25 = scalar_lea.vmem %s3946_s0, %s2909_s16  ;;  %vm296_vm5 = vcmask 1046534   ;;  %vm299_vm6 = vcmask 1047559   ;;  %vm302_vm7 = vcmask 1043456   ;;  %vm304_vm8 = vcmask 130048   ;;  %v260_v48 = vld [vmem:[%s3948_s2] sm:$0xff]  ;;  %s3526_s11 = scalar_lea.vmem [#allocation2], %s2876_s10 }
  0x17   : > { %2985 = vmatprep.subr.mxu0 %v3291_v2  ;;  %2992 = vmatprep.subr.mxu1 %v3291_v2  ;;  %v265_v5 = vld [vmem:[%s3419_s25] sm:$0x1]  ;;  %v266_v6 = vld [vmem:[%s3419_s25 + $0x10] sm:$0x1]  ;;  %v269_v9 = vld [vmem:[%s3419_s25 + $0x1] sm:$0x1]  ;;  %s3887_s16 = scalar_lea.hbm %s3951_s5, %s2910_s12 }
  0x18   : > { %2986 = vmatpush3.msra.mxu0 %v3399_v3  ;;  %2987 = vmatprep.mubr.msk.f32.mxu0 %vm3292_vm0, %v3291_v2  ;;  %v267_v7 = vld [vmem:[%s3419_s25 + $0x20] sm:$0x1]  ;;  %v268_v8 = vld [vmem:[%s3419_s25 + $0x30] sm:$0x1]  ;;  %v270_v10 = vld [vmem:[%s3419_s25 + $0x11] sm:$0x1] }
  0x19   : > { %2993 = vmatpush3.msra.mxu1 %v3406_v4  ;;  %2994 = vmatprep.mubr.msk.f32.mxu1 %vm3292_vm0, %v3291_v2  ;;  %v271_v11 = vld [vmem:[%s3419_s25 + $0x21] sm:$0x1]  ;;  %v272_v12 = vld [vmem:[%s3419_s25 + $0x31] sm:$0x1]  ;;  %v277_v13 = vrot.slane %v266_v6, 7  ;;  %v280_v14 = vrot.slane %v267_v7, 6 }
  0x1a   : > { %2997 = vmatprep.subr.mxu0 %v3291_v2  ;;  %3004 = vmatprep.subr.mxu1 %v3291_v2  ;;  %v283_v15 = vrot.slane %v268_v8, 5  ;;  %v291_v16 = vrot.slane %v269_v9, 4  ;;  %v292_v17 = vrot.slane %v270_v10, 3  ;;  %v295_v18 = vrot.slane %v271_v11, 2  ;;  %v595_v27 = vld [vmem:[%s3419_s25 + $0x12] sm:$0x1] }
  0x1b   : > { %v279_v19 = vsel %vm278_vm1, %v277_v13, %v265_v5  ;;  %v298_v20 = vrot.slane %v272_v12, 1  ;;  %v598_v28 = vld [vmem:[%s3419_s25 + $0x3] sm:$0x1]  ;;  %v599_v29 = vld [vmem:[%s3419_s25 + $0x13] sm:$0x1]  ;;  %v606_v32 = vrot.slane %v595_v27, 7 }
  0x1c   : > { %v282_v21 = vsel %vm281_vm2, %v280_v14, %v279_v19  ;;  %v294_v22 = vsel %vm293_vm4, %v292_v17, %v291_v16  ;;  %v596_v30 = vld [vmem:[%s3419_s25 + $0x22] sm:$0x1]  ;;  %v600_v31 = vld [vmem:[%s3419_s25 + $0x23] sm:$0x1]  ;;  %v617_v33 = vrot.slane %v598_v28, 4  ;;  %v618_v40 = vrot.slane %v599_v29, 3 }
  0x1d   : > { %v285_v23 = vsel %vm284_vm3, %v283_v15, %v282_v21  ;;  %v297_v24 = vsel %vm296_vm5, %v295_v18, %v294_v22  ;;  %v594_v34 = vld [vmem:[%s3419_s25 + $0x2] sm:$0x1]  ;;  %v597_v35 = vld [vmem:[%s3419_s25 + $0x32] sm:$0x1]  ;;  %v608_v36 = vrot.slane %v596_v30, 6  ;;  %v620_v41 = vrot.slane %v600_v31, 2 }
  0x1e   : > { %v300_v25 = vsel %vm299_vm6, %v298_v20, %v297_v24  ;;  %v601_v37 = vld [vmem:[%s3419_s25 + $0x33] sm:$0x1]  ;;  %v607_v38 = vsel %vm278_vm1, %v606_v32, %v594_v34  ;;  %v610_v39 = vrot.slane %v597_v35, 5  ;;  %v619_v45 = vsel %vm293_vm4, %v618_v40, %v617_v33  ;;  %v3472_v53 = vld [vmem:[%s3947_s1] sm:$0xff]  ;;  %v907_v56 = vld [vmem:[%s3419_s25 + $0x14] sm:$0x1] }
  0x1f   : > { %v303_v26 = vsel %vm302_vm7, %v285_v23, %v300_v25  ;;  %v609_v42 = vsel %vm281_vm2, %v608_v36, %v607_v38  ;;  %v622_v43 = vrot.slane %v601_v37, 1  ;;  %v621_v46 = vsel %vm296_vm5, %v620_v41, %v619_v45  ;;  %v910_v57 = vld [vmem:[%s3419_s25 + $0x5] sm:$0x1]  ;;  %v911_v58 = vld [vmem:[%s3419_s25 + $0x15] sm:$0x1]  ;;  %s2793_s13 = sshll.u32 %s3526_s11, 4  ;;  %s3889_s13 = int_to_ptr.vmem [resolvable:$true] %s2793_s13 }
  0x20   : > { %2988 = vmatmul.mubr.msk.f32.vlgmr.msra.gmra.mxu0 %vm304_vm8, %v303_v26  ;;  %2995 = vmatmul.mubr.msk.f32.vlgmr.msra.gmra.mxu1 %vm304_vm8, %v303_v26  ;;  %v611_v44 = vsel %vm284_vm3, %v610_v39, %v609_v42  ;;  %v3293_v50 = vmov 0   ;;  %v908_v60 = vld [vmem:[%s3419_s25 + $0x24] sm:$0x1]  ;;  %v912_v61 = vld [vmem:[%s3419_s25 + $0x25] sm:$0x1]  ;;  %v918_v62 = vrot.slane %v907_v56, 7  ;;  %v532_v23 = vlaneseq }
  0x21   : > { %3001 = vmatprep.mubr.msk.f32.mxu0 %vm3292_vm0, %v3291_v2  ;;  %3005 = vmatpush3.msra.mxu1 %v3386_v0  ;;  %v623_v47 = vsel %vm299_vm6, %v622_v43, %v621_v46  ;;  %v929_v63 = vrot.slane %v910_v57, 4  ;;  %v906_v5 = vld [vmem:[%s3419_s25 + $0x4] sm:$0x1]  ;;  %v909_v6 = vld [vmem:[%s3419_s25 + $0x34] sm:$0x1]  ;;  %v920_v10 = vrot.slane %v908_v60, 6 }
  0x22   : > { %3006 = vmatprep.subr.mxu1 %v3291_v2  ;;  %3008 = vmatprep.mubr.msk.f32.mxu1 %vm3292_vm0, %v3291_v2  ;;  %v625_v49 = vsel %vm302_vm7, %v611_v44, %v623_v47  ;;  %v913_v7 = vld [vmem:[%s3419_s25 + $0x35] sm:$0x1]  ;;  %v919_v9 = vsel %vm278_vm1, %v918_v62, %v906_v5  ;;  %v922_v11 = vrot.slane %v909_v6, 5  ;;  %v930_v12 = vrot.slane %v911_v58, 3  ;;  %v1219_v47 = vld [vmem:[%s3419_s25 + $0x16] sm:$0x1] }
  0x23   : > { %3007 = vmatpush3.msra.mxu1 %v3399_v3  ;;  %3212 = vset.pattern.permute.xlu0 %v3293_v50  ;;  %v932_v13 = vrot.slane %v912_v61, 2  ;;  %v934_v14 = vrot.slane %v913_v7, 1  ;;  %v921_v15 = vsel %vm281_vm2, %v920_v10, %v919_v9  ;;  %v3294_v21 = vmov 1966171168   ;;  %v1220_v50 = vld [vmem:[%s3419_s25 + $0x26] sm:$0x1] }
  0x24   : > { %3018 = vmatprep.subr.mxu1 %v3291_v2  ;;  %3009 = vmatmul.mubr.msk.f32.vlgmr.msra.gmra.mxu1 %vm304_vm8, %v625_v49  ;;  %v923_v16 = vsel %vm284_vm3, %v922_v11, %v921_v15  ;;  %v931_v17 = vsel %vm293_vm4, %v930_v12, %v929_v63  ;;  %v530_v22 = vunpack.c.l.s4 %v3294_v21  ;;  %v533_v25 = vshrl.u32 %v532_v23, 7  ;;  %v1218_v56 = vld [vmem:[%s3419_s25 + $0x6] sm:$0x1]  ;;  %v1221_v57 = vld [vmem:[%s3419_s25 + $0x36] sm:$0x1]  ;;  %s3213_s17 = scalar_lea.vmem %s3889_s13, 1024 }
  0x25   : > { %450 = vperm.xlu0 %3212, %v260_v48   ;;  %3022 = vmatprep.mubr.msk.f32.mxu1 %vm3292_vm0, %v3291_v2  ;;  %v933_v18 = vsel %vm296_vm5, %v932_v13, %v931_v17  ;;  %vm585_vm9 = vcmask 57344   ;;  %v1222_v48 = vld [vmem:[%s3419_s25 + $0x7] sm:$0x1]  ;;  %v1225_v58 = vld [vmem:[%s3419_s25 + $0x37] sm:$0x1]  ;;  %v1232_v60 = vrot.slane %v1220_v50, 6  ;;  %p3214_p12 = scmp.ne.s32.totalorder %s3889_s13, %s3213_s17 }
  0x26   : > { %v935_v19 = vsel %vm299_vm6, %v934_v14, %v933_v18  ;;  %v531_v24 = vunpack.c.0.s8 %v530_v22  ;;  %v1234_v61 = vrot.slane %v1221_v57, 5  ;;  %v1246_v6 = vrot.slane %v1225_v58, 1 }
  0x27   : > { %v937_v20 = vsel %vm302_vm7, %v923_v16, %v935_v19  ;;  %p3215_p13 = pnand %p3214_p12, %p3368_p4 }
  0x28   : > { %v3513_v29 = vsub.s32 %v531_v24, %v533_v25 }
  0x29   : > { %p3216_p0 = pneg %p3215_p13 }
  0xa0   : > { %v3509_v26 = vpop.permute.xlu0 %450 }
  0xe0   : > { %v374_v51 = vpop.f32.mrf.mxu0  ;;  %v444_v52 = vpop.f32.mrf.mxu1 }
  0xe1   : > { %2998 = vmatpush3.msra.mxu0 %v444_v52  ;;  %v1230_v52 = vrot.slane %v1219_v47, 7 }
  0xe2   : > { %v2989_v54 = vpop.f32.mrf.mxu0  ;;  %v2996_v55 = vpop.f32.mrf.mxu1  ;;  %2999 = vmatprep.subr.mxu0 %v3291_v2 }
  0xe3   : > { %3000 = vmatpush3.msra.mxu0 %v374_v51  ;;  %v1224_v51 = vld [vmem:[%s3419_s25 + $0x27] sm:$0x1]  ;;  %v1241_v54 = vrot.slane %v1222_v48, 4 }
  0xe4   : > { %3002 = vmatmul.mubr.msk.f32.vlgmr.msra.gmra.mxu0 %vm304_vm8, %v3472_v53  ;;  %3011 = vmatprep.subr.mxu0 %v3291_v2  ;;  %v695_v59 = vpop.f32.mrf.mxu1  ;;  %v1244_v5 = vrot.slane %v1224_v51, 2 }
  0xe5   : > { %3012 = vmatpush3.msra.mxu0 %v3391_v1  ;;  %3015 = vmatprep.mubr.msk.f32.mxu0 %vm3292_vm0, %v3291_v2 }
  0xe6   : > { %3013 = vmatprep.subr.mxu0 %v3291_v2  ;;  %v3010_v8 = vpop.f32.mrf.mxu1 }
  0xe7   : > { %3014 = vmatpush3.msra.mxu0 %v3406_v4 }
  0xe8   : > { %3016 = vmatmul.mubr.msk.f32.vlgmr.msra.gmra.mxu0 %vm304_vm8, %v625_v49  ;;  %3025 = vmatprep.subr.mxu0 %v3291_v2  ;;  %v1223_v49 = vld [vmem:[%s3419_s25 + $0x17] sm:$0x1] }
  0xe9   : > { %3026 = vmatpush3.msra.mxu0 %v3386_v0  ;;  %3029 = vmatprep.mubr.msk.f32.mxu0 %vm3292_vm0, %v3291_v2  ;;  %v1242_v62 = vrot.slane %v1223_v49, 3 }
  0xea   : > { %3027 = vmatprep.subr.mxu0 %v3291_v2 }
  0xeb   : > { %3028 = vmatpush3.msra.mxu0 %v3399_v3  ;;  %v1243_v8 = vsel %vm293_vm4, %v1242_v62, %v1241_v54 }
  0xec   : > { %3039 = vmatprep.subr.mxu0 %v3291_v2  ;;  %3030 = vmatmul.mubr.msk.f32.vlgmr.msra.gmra.mxu0 %vm304_vm8, %v937_v20  ;;  %v1245_v10 = vsel %vm296_vm5, %v1244_v5, %v1243_v8 }
  0xed   : > { %3043 = vmatprep.mubr.msk.f32.mxu0 %vm3292_vm0, %v3291_v2  ;;  %v1247_v11 = vsel %vm299_vm6, %v1246_v6, %v1245_v10 }
 0x1a4   : > { %v522_v27 = vpop.f32.mrf.mxu0 }
 0x1a5   : > { %v523_v28 = vadd.f32 %v522_v27, %v3509_v26 }
 0x1a6   : > { %v3003_v30 = vpop.f32.mrf.mxu0 }
 0x1a7   : > { %v526_v31 = vmax.f32 %v523_v28, 0.0 }
 0x1a8   : > { %v765_v32 = vpop.f32.mrf.mxu0 }
 0x1a9   : > { %v528_v33 = vcombine.high %v526_v31, %v526_v31  ;;  %v535_v34 = vrot.slane %v526_v31, %v3513_v29  ;;  %3019 = vmatpush3.msra.mxu1 %v765_v32 }
 0x1aa   : > { %v3017_v35 = vpop.f32.mrf.mxu0  ;;  %3020 = vmatprep.subr.mxu1 %v3291_v2 }
 0x1ab   : > { %v542_v36 = vrot.slane %v528_v33, %v3513_v29  ;;  %v543_v37 = vcombine.high %v535_v34, %v535_v34  ;;  %v551_v38 = vrot.slane %v535_v34, %v3513_v29  ;;  %3021 = vmatpush3.msra.mxu1 %v695_v59  ;;  %v1231_v59 = vsel %vm278_vm1, %v1230_v52, %v1218_v56  ;;  %v1531_v34 = vld [vmem:[%s3419_s25 + $0x18] sm:$0x1]  ;;  %v1534_v35 = vld [vmem:[%s3419_s25 + $0x9] sm:$0x1] }
 0x1ac   : > { %3023 = vmatmul.mubr.msk.f32.vlgmr.msra.gmra.mxu1 %vm304_vm8, %v3472_v53  ;;  %3032 = vmatprep.subr.mxu1 %v3291_v2  ;;  %v1007_v55 = vpop.f32.mrf.mxu0  ;;  %v1233_v7 = vsel %vm281_vm2, %v1232_v60, %v1231_v59 }
 0x1ad   : > { %v544_v39 = vcombine.high %v542_v36, %v542_v36  ;;  %v558_v40 = vrot.slane %v542_v36, %v3513_v29  ;;  %v565_v41 = vrot.slane %v543_v37, %v3513_v29  ;;  %v573_v42 = vcombine.high %v551_v38, %v551_v38  ;;  %586 = vst.msk [vmem:[%s3526_s11] sm:$0x1] %vm585_vm9, %v551_v38  ;;  %v1535_v36 = vld [vmem:[%s3419_s25 + $0x19] sm:$0x1]  ;;  %v1532_v38 = vld [vmem:[%s3419_s25 + $0x28] sm:$0x1] }
 0x1ae   : > { %3033 = vmatpush3.msra.mxu1 %v3391_v1  ;;  %3036 = vmatprep.mubr.msk.f32.mxu1 %vm3292_vm0, %v3291_v2  ;;  %v3031_v63 = vpop.f32.mrf.mxu0  ;;  %v1235_v9 = vsel %vm284_vm3, %v1234_v61, %v1233_v7  ;;  %v1544_v47 = vrot.slane %v1532_v38, 6  ;;  %v1554_v49 = vrot.slane %v1535_v36, 3 }
 0x1af   : > { %3034 = vmatprep.subr.mxu1 %v3291_v2  ;;  %v572_v43 = vrot.slane %v544_v39, %v3513_v29  ;;  %v574_v44 = vcombine.high %v558_v40, %v558_v40  ;;  %v575_v45 = vcombine.high %v565_v41, %v565_v41  ;;  %587 = vst.msk [vmem:[%s3526_s11 + $0x8] sm:$0x1] %vm585_vm9, %v565_v41  ;;  %588 = vst.msk [vmem:[%s3526_s11 + $0x10] sm:$0x1] %vm585_vm9, %v573_v42  ;;  %v1536_v39 = vld [vmem:[%s3419_s25 + $0x29] sm:$0x1] }
 0x1b0   : > { %590 = vst.msk [vmem:[%s3526_s11 + $0x20] sm:$0x1] %vm585_vm9, %v558_v40  ;;  %3035 = vmatpush3.msra.mxu1 %v3406_v4  ;;  %v1249_v12 = vsel %vm302_vm7, %v1235_v9, %v1247_v11  ;;  %v1542_v40 = vrot.slane %v1531_v34, 7  ;;  %v1553_v41 = vrot.slane %v1534_v35, 4  ;;  %v1530_v42 = vld [vmem:[%s3419_s25 + $0x8] sm:$0x1] }
 0x1b1   : > { %3037 = vmatmul.mubr.msk.f32.vlgmr.msra.gmra.mxu1 %vm304_vm8, %v937_v20  ;;  %3046 = vmatprep.subr.mxu1 %v3291_v2  ;;  %v576_v46 = vcombine.high %v572_v43, %v572_v43  ;;  %589 = vst.msk [vmem:[%s3526_s11 + $0x18] sm:$0x1] %vm585_vm9, %v575_v45  ;;  %591 = vst.msk [vmem:[%s3526_s11 + $0x28] sm:$0x1] %vm585_vm9, %v572_v43  ;;  %v1533_v43 = vld [vmem:[%s3419_s25 + $0x38] sm:$0x1] }
 0x1b2   : > { %592 = vst.msk [vmem:[%s3526_s11 + $0x30] sm:$0x1] %vm585_vm9, %v574_v44  ;;  %3047 = vmatpush3.msra.mxu1 %v3386_v0  ;;  %3050 = vmatprep.mubr.msk.f32.mxu1 %vm3292_vm0, %v3291_v2  ;;  %v1537_v44 = vld [vmem:[%s3419_s25 + $0x39] sm:$0x1]  ;;  %v1546_v48 = vrot.slane %v1533_v43, 5  ;;  %v1556_v50 = vrot.slane %v1536_v39, 2  ;;  %v1555_v54 = vsel %vm293_vm4, %v1554_v49, %v1553_v41 }
 0x1b3   : > { %3048 = vmatprep.subr.mxu1 %v3291_v2  ;;  %593 = vst.msk [vmem:[%s3526_s11 + $0x38] sm:$0x1] %vm585_vm9, %v576_v46  ;;  %v1543_v46 = vsel %vm278_vm1, %v1542_v40, %v1530_v42  ;;  %v1558_v51 = vrot.slane %v1537_v44, 1 }
 0x1b4   : > { %3049 = vmatpush3.msra.mxu1 %v3399_v3  ;;  %v1545_v52 = vsel %vm281_vm2, %v1544_v47, %v1543_v46  ;;  %v1557_v56 = vsel %vm296_vm5, %v1556_v50, %v1555_v54 }
 0x1b5   : > { %3060 = vmatprep.subr.mxu1 %v3291_v2  ;;  %3051 = vmatmul.mubr.msk.f32.vlgmr.msra.gmra.mxu1 %vm304_vm8, %v1249_v12  ;;  %v1559_v57 = vsel %vm299_vm6, %v1558_v51, %v1557_v56 }
 0x1b6   : > { %3064 = vmatprep.mubr.msk.f32.mxu1 %vm3292_vm0, %v3291_v2 }
 0x26c   : > { %v835_v13 = vpop.f32.mrf.mxu1 }
 0x26d   : > { %v836_v14 = vadd.f32 %v835_v13, %v3509_v26 }
 0x26e   : > { %v3024_v15 = vpop.f32.mrf.mxu1 }
 0x26f   : > { %v839_v16 = vmax.f32 %v836_v14, 0.0 }
 0x271   : > { %v1077_v17 = vpop.f32.mrf.mxu1  ;;  %v841_v18 = vcombine.high %v839_v16, %v839_v16  ;;  %v848_v19 = vrot.slane %v839_v16, %v3513_v29 }
 0x272   : > { %3040 = vmatpush3.msra.mxu0 %v1077_v17 }
 0x273   : > { %v3038_v20 = vpop.f32.mrf.mxu1  ;;  %3041 = vmatprep.subr.mxu0 %v3291_v2  ;;  %v855_v21 = vrot.slane %v841_v18, %v3513_v29  ;;  %v856_v22 = vcombine.high %v848_v19, %v848_v19  ;;  %v864_v23 = vrot.slane %v848_v19, %v3513_v29  ;;  %v1843_v19 = vld [vmem:[%s3419_s25 + $0x1a] sm:$0x1] }
 0x274   : > { %3042 = vmatpush3.msra.mxu0 %v1007_v55  ;;  %v1547_v55 = vsel %vm284_vm3, %v1546_v48, %v1545_v52  ;;  %v1846_v20 = vld [vmem:[%s3419_s25 + $0xb] sm:$0x1] }
 0x275   : > { %3044 = vmatmul.mubr.msk.f32.vlgmr.msra.gmra.mxu0 %vm304_vm8, %v3472_v53  ;;  %3053 = vmatprep.subr.mxu0 %v3291_v2  ;;  %v857_v24 = vcombine.high %v855_v21, %v855_v21  ;;  %v871_v25 = vrot.slane %v855_v21, %v3513_v29  ;;  %v878_v27 = vrot.slane %v856_v22, %v3513_v29  ;;  %v1319_v37 = vpop.f32.mrf.mxu1  ;;  %v1847_v21 = vld [vmem:[%s3419_s25 + $0x1b] sm:$0x1] }
 0x276   : > { %v886_v28 = vcombine.high %v864_v23, %v864_v23  ;;  %898 = vst.msk [vmem:[%s3526_s11 + $0x1] sm:$0x1] %vm585_vm9, %v864_v23  ;;  %3054 = vmatpush3.msra.mxu0 %v3391_v1  ;;  %3057 = vmatprep.mubr.msk.f32.mxu0 %vm3292_vm0, %v3291_v2  ;;  %v1561_v58 = vsel %vm302_vm7, %v1547_v55, %v1559_v57  ;;  %v1844_v23 = vld [vmem:[%s3419_s25 + $0x2a] sm:$0x1]  ;;  %v1866_v36 = vrot.slane %v1847_v21, 3 }
 0x277   : > { %3055 = vmatprep.subr.mxu0 %v3291_v2  ;;  %v885_v30 = vrot.slane %v857_v24, %v3513_v29  ;;  %v887_v31 = vcombine.high %v871_v25, %v871_v25  ;;  %v888_v32 = vcombine.high %v878_v27, %v878_v27  ;;  %899 = vst.msk [vmem:[%s3526_s11 + $0x9] sm:$0x1] %vm585_vm9, %v878_v27  ;;  %902 = vst.msk [vmem:[%s3526_s11 + $0x21] sm:$0x1] %vm585_vm9, %v871_v25  ;;  %v3052_v45 = vpop.f32.mrf.mxu1  ;;  %v1848_v24 = vld [vmem:[%s3419_s25 + $0x2b] sm:$0x1] }
 0x278   : > { %900 = vst.msk [vmem:[%s3526_s11 + $0x11] sm:$0x1] %vm585_vm9, %v886_v28  ;;  %3056 = vmatpush3.msra.mxu0 %v3406_v4  ;;  %v1854_v25 = vrot.slane %v1843_v19, 7  ;;  %v1865_v27 = vrot.slane %v1846_v20, 4  ;;  %v1842_v28 = vld [vmem:[%s3419_s25 + $0xa] sm:$0x1] }
 0x279   : > { %3058 = vmatmul.mubr.msk.f32.vlgmr.msra.gmra.mxu0 %vm304_vm8, %v1249_v12  ;;  %3067 = vmatprep.subr.mxu0 %v3291_v2  ;;  %v889_v33 = vcombine.high %v885_v30, %v885_v30  ;;  %901 = vst.msk [vmem:[%s3526_s11 + $0x19] sm:$0x1] %vm585_vm9, %v888_v32  ;;  %903 = vst.msk [vmem:[%s3526_s11 + $0x29] sm:$0x1] %vm585_vm9, %v885_v30  ;;  %v1845_v30 = vld [vmem:[%s3419_s25 + $0x3a] sm:$0x1] }
 0x27a   : > { %904 = vst.msk [vmem:[%s3526_s11 + $0x31] sm:$0x1] %vm585_vm9, %v887_v31  ;;  %3068 = vmatpush3.msra.mxu0 %v3386_v0  ;;  %3071 = vmatprep.mubr.msk.f32.mxu0 %vm3292_vm0, %v3291_v2  ;;  %v1849_v31 = vld [vmem:[%s3419_s25 + $0x3b] sm:$0x1]  ;;  %v1856_v34 = vrot.slane %v1844_v23, 6  ;;  %v1858_v35 = vrot.slane %v1845_v30, 5  ;;  %v1867_v40 = vsel %vm293_vm4, %v1866_v36, %v1865_v27 }
 0x27b   : > { %3069 = vmatprep.subr.mxu0 %v3291_v2  ;;  %905 = vst.msk [vmem:[%s3526_s11 + $0x39] sm:$0x1] %vm585_vm9, %v889_v33  ;;  %v1855_v33 = vsel %vm278_vm1, %v1854_v25, %v1842_v28  ;;  %v1870_v38 = vrot.slane %v1849_v31, 1 }
 0x27c   : > { %3070 = vmatpush3.msra.mxu0 %v3399_v3  ;;  %v1857_v39 = vsel %vm281_vm2, %v1856_v34, %v1855_v33 }
 0x27d   : > { %3081 = vmatprep.subr.mxu0 %v3291_v2  ;;  %3072 = vmatmul.mubr.msk.f32.vlgmr.msra.gmra.mxu0 %vm304_vm8, %v1561_v58  ;;  %v1859_v41 = vsel %vm284_vm3, %v1858_v35, %v1857_v39 }
 0x27e   : > { %3085 = vmatprep.mubr.msk.f32.mxu0 %vm3292_vm0, %v3291_v2 }
 0x335   : > { %v1147_v59 = vpop.f32.mrf.mxu0 }
 0x336   : > { %v1148_v60 = vadd.f32 %v1147_v59, %v3509_v26 }
 0x337   : > { %v3045_v61 = vpop.f32.mrf.mxu0 }
 0x338   : > { %v1151_v62 = vmax.f32 %v1148_v60, 0.0 }
 0x339   : > { %v1389_v63 = vpop.f32.mrf.mxu0 }
 0x33a   : > { %v1153_v5 = vcombine.high %v1151_v62, %v1151_v62  ;;  %v1160_v6 = vrot.slane %v1151_v62, %v3513_v29  ;;  %3061 = vmatpush3.msra.mxu1 %v1389_v63 }
 0x33b   : > { %v3059_v7 = vpop.f32.mrf.mxu0  ;;  %3062 = vmatprep.subr.mxu1 %v3291_v2 }
 0x33c   : > { %v1167_v8 = vrot.slane %v1153_v5, %v3513_v29  ;;  %v1168_v9 = vcombine.high %v1160_v6, %v1160_v6  ;;  %v1176_v10 = vrot.slane %v1160_v6, %v3513_v29  ;;  %3063 = vmatpush3.msra.mxu1 %v1319_v37  ;;  %v1868_v37 = vrot.slane %v1848_v24, 2  ;;  %v2155_v6 = vld [vmem:[%s3419_s25 + $0x1c] sm:$0x1]  ;;  %v2158_v7 = vld [vmem:[%s3419_s25 + $0xd] sm:$0x1] }
 0x33d   : > { %3065 = vmatmul.mubr.msk.f32.vlgmr.msra.gmra.mxu1 %vm304_vm8, %v3472_v53  ;;  %3074 = vmatprep.subr.mxu1 %v3291_v2  ;;  %v1631_v22 = vpop.f32.mrf.mxu0 }
 0x33e   : > { %v1169_v11 = vcombine.high %v1167_v8, %v1167_v8  ;;  %v1183_v12 = vrot.slane %v1167_v8, %v3513_v29  ;;  %v1190_v13 = vrot.slane %v1168_v9, %v3513_v29  ;;  %v1198_v14 = vcombine.high %v1176_v10, %v1176_v10  ;;  %1210 = vst.msk [vmem:[%s3526_s11 + $0x2] sm:$0x1] %vm585_vm9, %v1176_v10  ;;  %v2159_v8 = vld [vmem:[%s3419_s25 + $0x1d] sm:$0x1]  ;;  %v2156_v10 = vld [vmem:[%s3419_s25 + $0x2c] sm:$0x1] }
 0x33f   : > { %3075 = vmatpush3.msra.mxu1 %v3391_v1  ;;  %3078 = vmatprep.mubr.msk.f32.mxu1 %vm3292_vm0, %v3291_v2  ;;  %v3073_v32 = vpop.f32.mrf.mxu0  ;;  %v1869_v42 = vsel %vm296_vm5, %v1868_v37, %v1867_v40  ;;  %v2168_v19 = vrot.slane %v2156_v10, 6  ;;  %v2178_v21 = vrot.slane %v2159_v8, 3 }
 0x340   : > { %3076 = vmatprep.subr.mxu1 %v3291_v2  ;;  %v1197_v15 = vrot.slane %v1169_v11, %v3513_v29  ;;  %v1199_v16 = vcombine.high %v1183_v12, %v1183_v12  ;;  %v1200_v17 = vcombine.high %v1190_v13, %v1190_v13  ;;  %1211 = vst.msk [vmem:[%s3526_s11 + $0xa] sm:$0x1] %vm585_vm9, %v1190_v13  ;;  %1212 = vst.msk [vmem:[%s3526_s11 + $0x12] sm:$0x1] %vm585_vm9, %v1198_v14  ;;  %v2160_v11 = vld [vmem:[%s3419_s25 + $0x2d] sm:$0x1] }
 0x341   : > { %1214 = vst.msk [vmem:[%s3526_s11 + $0x22] sm:$0x1] %vm585_vm9, %v1183_v12  ;;  %3077 = vmatpush3.msra.mxu1 %v3406_v4  ;;  %v1871_v43 = vsel %vm299_vm6, %v1870_v38, %v1869_v42  ;;  %v2166_v12 = vrot.slane %v2155_v6, 7  ;;  %v2177_v13 = vrot.slane %v2158_v7, 4  ;;  %v2154_v14 = vld [vmem:[%s3419_s25 + $0xc] sm:$0x1] }
 0x342   : > { %3079 = vmatmul.mubr.msk.f32.vlgmr.msra.gmra.mxu1 %vm304_vm8, %v1561_v58  ;;  %3088 = vmatprep.subr.mxu1 %v3291_v2  ;;  %v1201_v18 = vcombine.high %v1197_v15, %v1197_v15  ;;  %1213 = vst.msk [vmem:[%s3526_s11 + $0x1a] sm:$0x1] %vm585_vm9, %v1200_v17  ;;  %1215 = vst.msk [vmem:[%s3526_s11 + $0x2a] sm:$0x1] %vm585_vm9, %v1197_v15  ;;  %v1873_v44 = vsel %vm302_vm7, %v1859_v41, %v1871_v43  ;;  %v2157_v15 = vld [vmem:[%s3419_s25 + $0x3c] sm:$0x1] }
 0x343   : > { %1216 = vst.msk [vmem:[%s3526_s11 + $0x32] sm:$0x1] %vm585_vm9, %v1199_v16  ;;  %3089 = vmatpush3.msra.mxu1 %v3386_v0  ;;  %3092 = vmatprep.mubr.msk.f32.mxu1 %vm3292_vm0, %v3291_v2  ;;  %v2161_v16 = vld [vmem:[%s3419_s25 + $0x3d] sm:$0x1]  ;;  %v2170_v20 = vrot.slane %v2157_v15, 5  ;;  %v2179_v25 = vsel %vm293_vm4, %v2178_v21, %v2177_v13 }
 0x344   : > { %3090 = vmatprep.subr.mxu1 %v3291_v2  ;;  %1217 = vst.msk [vmem:[%s3526_s11 + $0x3a] sm:$0x1] %vm585_vm9, %v1201_v18  ;;  %v2167_v18 = vsel %vm278_vm1, %v2166_v12, %v2154_v14  ;;  %v2182_v23 = vrot.slane %v2161_v16, 1 }
 0x345   : > { %3091 = vmatpush3.msra.mxu1 %v3399_v3  ;;  %v2169_v24 = vsel %vm281_vm2, %v2168_v19, %v2167_v18 }
 0x346   : > { %3102 = vmatprep.subr.mxu1 %v3291_v2  ;;  %3093 = vmatmul.mubr.msk.f32.vlgmr.msra.gmra.mxu1 %vm304_vm8, %v1873_v44  ;;  %v2171_v27 = vsel %vm284_vm3, %v2170_v20, %v2169_v24 }
 0x347   : > { %3106 = vmatprep.mubr.msk.f32.mxu1 %vm3292_vm0, %v3291_v2 }
 0x3fd   : > { %v1459_v45 = vpop.f32.mrf.mxu1 }
 0x3fe   : > { %v1460_v46 = vadd.f32 %v1459_v45, %v3509_v26 }
 0x3ff   : > { %v3066_v47 = vpop.f32.mrf.mxu1 }
 0x400   : > { %v1463_v48 = vmax.f32 %v1460_v46, 0.0 }
 0x402   : > { %v1701_v49 = vpop.f32.mrf.mxu1  ;;  %v1465_v50 = vcombine.high %v1463_v48, %v1463_v48  ;;  %v1472_v51 = vrot.slane %v1463_v48, %v3513_v29 }
 0x403   : > { %3082 = vmatpush3.msra.mxu0 %v1701_v49 }
 0x404   : > { %v3080_v52 = vpop.f32.mrf.mxu1  ;;  %3083 = vmatprep.subr.mxu0 %v3291_v2  ;;  %v1479_v54 = vrot.slane %v1465_v50, %v3513_v29  ;;  %v1480_v55 = vcombine.high %v1472_v51, %v1472_v51  ;;  %v1488_v56 = vrot.slane %v1472_v51, %v3513_v29  ;;  %v2467_v51 = vld [vmem:[%s3419_s25 + $0x1e] sm:$0x1] }
 0x405   : > { %3084 = vmatpush3.msra.mxu0 %v1631_v22  ;;  %v2180_v22 = vrot.slane %v2160_v11, 2  ;;  %v2470_v52 = vld [vmem:[%s3419_s25 + $0xf] sm:$0x1] }
 0x406   : > { %3086 = vmatmul.mubr.msk.f32.vlgmr.msra.gmra.mxu0 %vm304_vm8, %v3472_v53  ;;  %3095 = vmatprep.subr.mxu0 %v3291_v2  ;;  %v1481_v57 = vcombine.high %v1479_v54, %v1479_v54  ;;  %v1495_v58 = vrot.slane %v1479_v54, %v3513_v29  ;;  %v1502_v59 = vrot.slane %v1480_v55, %v3513_v29  ;;  %v1943_v9 = vpop.f32.mrf.mxu1  ;;  %v2471_v54 = vld [vmem:[%s3419_s25 + $0x1f] sm:$0x1] }
 0x407   : > { %v1510_v60 = vcombine.high %v1488_v56, %v1488_v56  ;;  %1522 = vst.msk [vmem:[%s3526_s11 + $0x3] sm:$0x1] %vm585_vm9, %v1488_v56  ;;  %3096 = vmatpush3.msra.mxu0 %v3391_v1  ;;  %3099 = vmatprep.mubr.msk.f32.mxu0 %vm3292_vm0, %v3291_v2  ;;  %v2181_v28 = vsel %vm296_vm5, %v2180_v22, %v2179_v25  ;;  %v2468_v56 = vld [vmem:[%s3419_s25 + $0x2e] sm:$0x1]  ;;  %v2490_v7 = vrot.slane %v2471_v54, 3 }
 0x408   : > { %3097 = vmatprep.subr.mxu0 %v3291_v2  ;;  %v1509_v61 = vrot.slane %v1481_v57, %v3513_v29  ;;  %v1511_v62 = vcombine.high %v1495_v58, %v1495_v58  ;;  %v1512_v63 = vcombine.high %v1502_v59, %v1502_v59  ;;  %1523 = vst.msk [vmem:[%s3526_s11 + $0xb] sm:$0x1] %vm585_vm9, %v1502_v59  ;;  %1526 = vst.msk [vmem:[%s3526_s11 + $0x23] sm:$0x1] %vm585_vm9, %v1495_v58  ;;  %v3094_v17 = vpop.f32.mrf.mxu1  ;;  %v2472_v57 = vld [vmem:[%s3419_s25 + $0x2f] sm:$0x1] }
 0x409   : > { %1524 = vst.msk [vmem:[%s3526_s11 + $0x13] sm:$0x1] %vm585_vm9, %v1510_v60  ;;  %3098 = vmatpush3.msra.mxu0 %v3406_v4  ;;  %v2183_v30 = vsel %vm299_vm6, %v2182_v23, %v2181_v28  ;;  %v2478_v58 = vrot.slane %v2467_v51, 7  ;;  %v2466_v59 = vld [vmem:[%s3419_s25 + $0xe] sm:$0x1] }
 0x40a   : > { %3100 = vmatmul.mubr.msk.f32.vlgmr.msra.gmra.mxu0 %vm304_vm8, %v1873_v44  ;;  %3109 = vmatprep.subr.mxu0 %v3291_v2  ;;  %v1513_v5 = vcombine.high %v1509_v61, %v1509_v61  ;;  %1525 = vst.msk [vmem:[%s3526_s11 + $0x1b] sm:$0x1] %vm585_vm9, %v1512_v63  ;;  %1527 = vst.msk [vmem:[%s3526_s11 + $0x2b] sm:$0x1] %vm585_vm9, %v1509_v61  ;;  %v2185_v31 = vsel %vm302_vm7, %v2171_v27, %v2183_v30  ;;  %v2469_v60 = vld [vmem:[%s3419_s25 + $0x3e] sm:$0x1] }
 0x40b   : > { %1528 = vst.msk [vmem:[%s3526_s11 + $0x33] sm:$0x1] %vm585_vm9, %v1511_v62  ;;  %3110 = vmatpush3.msra.mxu0 %v3386_v0  ;;  %3113 = vmatprep.mubr.msk.f32.mxu0 %vm3292_vm0, %v3291_v2  ;;  %v2473_v61 = vld [vmem:[%s3419_s25 + $0x3f] sm:$0x1]  ;;  %v2479_v63 = vsel %vm278_vm1, %v2478_v58, %v2466_v59  ;;  %v2482_v6 = vrot.slane %v2469_v60, 5  ;;  %s3217_s25 = sshll.u32 %s3295_s24, 4  ;;  %s3218_s25 = int_to_ptr.vmem [resolvable:$false] %s3217_s25 }
 0x40c   : > { %3111 = vmatprep.subr.mxu0 %v3291_v2  ;;  %1529 = vst.msk [vmem:[%s3526_s11 + $0x3b] sm:$0x1] %vm585_vm9, %v1513_v5  ;;  %v2480_v5 = vrot.slane %v2468_v56, 6  ;;  %v2494_v8 = vrot.slane %v2473_v61, 1  ;;  %s3219_s27 = scalar_lea.vmem %s3218_s25, 2048  ;;  %p3220_p1 = scmp.lt.s32.totalorder %s3889_s13, %s3218_s25 }
 0x40d   : > { %3112 = vmatpush3.msra.mxu0 %v3399_v3  ;;  %p3221_p2 = scmp.lt.s32.totalorder %s3219_s27, %s3213_s17 }
 0x40e   : > { %3123 = vmatprep.subr.mxu0 %v3291_v2  ;;  %3114 = vmatmul.mubr.msk.f32.vlgmr.msra.gmra.mxu0 %vm304_vm8, %v2185_v31 }
 0x40f   : > { %3127 = vmatprep.mubr.msk.f32.mxu0 %vm3292_vm0, %v3291_v2  ;;  %p3222_p3 = por %p3221_p2, %p3220_p1 }
 0x411   : > { %p3223_p5 = pnand %p3222_p3, %p3216_p0 }
 0x4c6   : > { %v1771_v32 = vpop.f32.mrf.mxu0 }
 0x4c7   : > { %v1772_v33 = vadd.f32 %v1771_v32, %v3509_v26 }
 0x4c8   : > { %v3087_v34 = vpop.f32.mrf.mxu0 }
 0x4c9   : > { %v1775_v35 = vmax.f32 %v1772_v33, 0.0 }
 0x4ca   : > { %v2013_v36 = vpop.f32.mrf.mxu0 }
 0x4cb   : > { %v1777_v37 = vcombine.high %v1775_v35, %v1775_v35  ;;  %v1784_v38 = vrot.slane %v1775_v35, %v3513_v29  ;;  %3103 = vmatpush3.msra.mxu1 %v2013_v36 }
 0x4cc   : > { %v3101_v39 = vpop.f32.mrf.mxu0  ;;  %3104 = vmatprep.subr.mxu1 %v3291_v2 }
 0x4cd   : > { %v1791_v40 = vrot.slane %v1777_v37, %v3513_v29  ;;  %v1792_v41 = vcombine.high %v1784_v38, %v1784_v38  ;;  %v1800_v42 = vrot.slane %v1784_v38, %v3513_v29  ;;  %3105 = vmatpush3.msra.mxu1 %v1943_v9  ;;  %v2481_v9 = vsel %vm281_vm2, %v2480_v5, %v2479_v63 }
 0x4ce   : > { %3107 = vmatmul.mubr.msk.f32.vlgmr.msra.gmra.mxu1 %vm304_vm8, %v3472_v53  ;;  %3116 = vmatprep.subr.mxu1 %v3291_v2  ;;  %v2255_v55 = vpop.f32.mrf.mxu0  ;;  %v2483_v11 = vsel %vm284_vm3, %v2482_v6, %v2481_v9 }
 0x4cf   : > { %v1793_v43 = vcombine.high %v1791_v40, %v1791_v40  ;;  %v1807_v44 = vrot.slane %v1791_v40, %v3513_v29  ;;  %v1814_v45 = vrot.slane %v1792_v41, %v3513_v29  ;;  %v1822_v46 = vcombine.high %v1800_v42, %v1800_v42  ;;  %1834 = vst.msk [vmem:[%s3526_s11 + $0x4] sm:$0x1] %vm585_vm9, %v1800_v42 }
 0x4d0   : > { %3117 = vmatpush3.msra.mxu1 %v3391_v1  ;;  %3120 = vmatprep.mubr.msk.f32.mxu1 %vm3292_vm0, %v3291_v2  ;;  %v3115_v62 = vpop.f32.mrf.mxu0 }
 0x4d1   : > { %3118 = vmatprep.subr.mxu1 %v3291_v2  ;;  %v1821_v47 = vrot.slane %v1793_v43, %v3513_v29  ;;  %v1823_v48 = vcombine.high %v1807_v44, %v1807_v44  ;;  %v1824_v49 = vcombine.high %v1814_v45, %v1814_v45  ;;  %1835 = vst.msk [vmem:[%s3526_s11 + $0xc] sm:$0x1] %vm585_vm9, %v1814_v45  ;;  %1836 = vst.msk [vmem:[%s3526_s11 + $0x14] sm:$0x1] %vm585_vm9, %v1822_v46 }
 0x4d2   : > { %1838 = vst.msk [vmem:[%s3526_s11 + $0x24] sm:$0x1] %vm585_vm9, %v1807_v44  ;;  %3119 = vmatpush3.msra.mxu1 %v3406_v4 }
 0x4d3   : > { %3121 = vmatmul.mubr.msk.f32.vlgmr.msra.gmra.mxu1 %vm304_vm8, %v2185_v31  ;;  %3130 = vmatprep.subr.mxu1 %v3291_v2  ;;  %v1825_v50 = vcombine.high %v1821_v47, %v1821_v47  ;;  %1837 = vst.msk [vmem:[%s3526_s11 + $0x1c] sm:$0x1] %vm585_vm9, %v1824_v49  ;;  %1839 = vst.msk [vmem:[%s3526_s11 + $0x2c] sm:$0x1] %vm585_vm9, %v1821_v47 }
 0x4d4   : > { %1840 = vst.msk [vmem:[%s3526_s11 + $0x34] sm:$0x1] %vm585_vm9, %v1823_v48  ;;  %3131 = vmatpush3.msra.mxu1 %v3386_v0  ;;  %3134 = vmatprep.mubr.msk.f32.mxu1 %vm3292_vm0, %v3291_v2  ;;  %v2489_v0 = vrot.slane %v2470_v52, 4 }
 0x4d5   : > { %3132 = vmatprep.subr.mxu1 %v3291_v2  ;;  %1841 = vst.msk [vmem:[%s3526_s11 + $0x3c] sm:$0x1] %vm585_vm9, %v1825_v50 }
 0x4d6   : > { %3133 = vmatpush3.msra.mxu1 %v3399_v3  ;;  %v2492_v3 = vrot.slane %v2472_v57, 2  ;;  %v2491_v10 = vsel %vm293_vm4, %v2490_v7, %v2489_v0 }
 0x4d7   : > { %3144 = vmatprep.subr.mxu1 %v3291_v2 }
 0x4d8   : > { %v2493_v12 = vsel %vm296_vm5, %v2492_v3, %v2491_v10 }
 0x4d9   : > { %v2495_v13 = vsel %vm299_vm6, %v2494_v8, %v2493_v12 }
 0x4da   : > { %v2497_v14 = vsel %vm302_vm7, %v2483_v11, %v2495_v13 }
 0x4db   : > { %3135 = vmatmul.mubr.msk.f32.vlgmr.msra.gmra.mxu1 %vm304_vm8, %v2497_v14 }
 0x4dc   : > { %3148 = vmatprep.mubr.msk.f32.mxu1 %vm3292_vm0, %v3291_v2 }
 0x58e   : > { %v2083_v15 = vpop.f32.mrf.mxu1 }
 0x58f   : > { %v2084_v16 = vadd.f32 %v2083_v15, %v3509_v26 }
 0x590   : > { %v3108_v17 = vpop.f32.mrf.mxu1 }
 0x591   : > { %v2087_v18 = vmax.f32 %v2084_v16, 0.0 }
 0x593   : > { %v2325_v19 = vpop.f32.mrf.mxu1  ;;  %v2089_v20 = vcombine.high %v2087_v18, %v2087_v18  ;;  %v2096_v21 = vrot.slane %v2087_v18, %v3513_v29 }
 0x594   : > { %3124 = vmatpush3.msra.mxu0 %v2325_v19 }
 0x595   : > { %v3122_v22 = vpop.f32.mrf.mxu1  ;;  %3125 = vmatprep.subr.mxu0 %v3291_v2  ;;  %v2103_v23 = vrot.slane %v2089_v20, %v3513_v29  ;;  %v2104_v24 = vcombine.high %v2096_v21, %v2096_v21  ;;  %v2112_v25 = vrot.slane %v2096_v21, %v3513_v29 }
 0x596   : > { %3126 = vmatpush3.msra.mxu0 %v2255_v55 }
 0x597   : > { %3128 = vmatmul.mubr.msk.f32.vlgmr.msra.gmra.mxu0 %vm304_vm8, %v3472_v53  ;;  %3137 = vmatprep.subr.mxu0 %v3291_v2  ;;  %v2105_v27 = vcombine.high %v2103_v23, %v2103_v23  ;;  %v2119_v28 = vrot.slane %v2103_v23, %v3513_v29  ;;  %v2126_v30 = vrot.slane %v2104_v24, %v3513_v29 }
 0x598   : > { %v2134_v31 = vcombine.high %v2112_v25, %v2112_v25  ;;  %2146 = vst.msk [vmem:[%s3526_s11 + $0x5] sm:$0x1] %vm585_vm9, %v2112_v25  ;;  %3138 = vmatpush3.msra.mxu0 %v3391_v1  ;;  %3141 = vmatprep.mubr.msk.f32.mxu0 %vm3292_vm0, %v3291_v2 }
 0x599   : > { %3139 = vmatprep.subr.mxu0 %v3291_v2  ;;  %v2133_v32 = vrot.slane %v2105_v27, %v3513_v29  ;;  %v2135_v33 = vcombine.high %v2119_v28, %v2119_v28  ;;  %v2136_v34 = vcombine.high %v2126_v30, %v2126_v30  ;;  %2147 = vst.msk [vmem:[%s3526_s11 + $0xd] sm:$0x1] %vm585_vm9, %v2126_v30  ;;  %2150 = vst.msk [vmem:[%s3526_s11 + $0x25] sm:$0x1] %vm585_vm9, %v2119_v28 }
 0x59a   : > { %2148 = vst.msk [vmem:[%s3526_s11 + $0x15] sm:$0x1] %vm585_vm9, %v2134_v31  ;;  %3140 = vmatpush3.msra.mxu0 %v3406_v4 }
 0x59b   : > { %3142 = vmatmul.mubr.msk.f32.vlgmr.msra.gmra.mxu0 %vm304_vm8, %v2497_v14  ;;  %v2137_v1 = vcombine.high %v2133_v32, %v2133_v32  ;;  %2149 = vst.msk [vmem:[%s3526_s11 + $0x1d] sm:$0x1] %vm585_vm9, %v2136_v34  ;;  %2151 = vst.msk [vmem:[%s3526_s11 + $0x2d] sm:$0x1] %vm585_vm9, %v2133_v32  ;;  %v2567_v35 = vpop.f32.mrf.mxu1 }
 0x59c   : > { %2152 = vst.msk [vmem:[%s3526_s11 + $0x35] sm:$0x1] %vm585_vm9, %v2135_v33 }
 0x59d   : > { %2153 = vst.msk [vmem:[%s3526_s11 + $0x3d] sm:$0x1] %vm585_vm9, %v2137_v1  ;;  %v3136_v36 = vpop.f32.mrf.mxu1 }
 0x657   : > { %v2395_v37 = vpop.f32.mrf.mxu0 }
 0x658   : > { %v2396_v38 = vadd.f32 %v2395_v37, %v3509_v26 }
 0x659   : > { %v3129_v39 = vpop.f32.mrf.mxu0 }
 0x65a   : > { %v2399_v40 = vmax.f32 %v2396_v38, 0.0 }
 0x65b   : > { %v2637_v4 = vpop.f32.mrf.mxu0 }
 0x65c   : > { %v2401_v41 = vcombine.high %v2399_v40, %v2399_v40  ;;  %v2408_v42 = vrot.slane %v2399_v40, %v3513_v29  ;;  %3145 = vmatpush3.msra.mxu1 %v2637_v4 }
 0x65d   : > { %v3143_v43 = vpop.f32.mrf.mxu0  ;;  %3146 = vmatprep.subr.mxu1 %v3291_v2 }
 0x65e   : > { %v2415_v44 = vrot.slane %v2401_v41, %v3513_v29  ;;  %v2416_v45 = vcombine.high %v2408_v42, %v2408_v42  ;;  %v2424_v46 = vrot.slane %v2408_v42, %v3513_v29  ;;  %3147 = vmatpush3.msra.mxu1 %v2567_v35 }
 0x65f   : > { %3149 = vmatmul.mubr.msk.f32.vlgmr.msra.gmra.mxu1 %vm304_vm8, %v3472_v53 }
 0x660   : > { %v2417_v47 = vcombine.high %v2415_v44, %v2415_v44  ;;  %v2431_v48 = vrot.slane %v2415_v44, %v3513_v29  ;;  %v2438_v49 = vrot.slane %v2416_v45, %v3513_v29  ;;  %v2446_v2 = vcombine.high %v2424_v46, %v2424_v46  ;;  %2458 = vst.msk [vmem:[%s3526_s11 + $0x6] sm:$0x1] %vm585_vm9, %v2424_v46 }
 0x662   : > { %v2445_v50 = vrot.slane %v2417_v47, %v3513_v29  ;;  %v2447_v51 = vcombine.high %v2431_v48, %v2431_v48  ;;  %v2448_v52 = vcombine.high %v2438_v49, %v2438_v49  ;;  %2459 = vst.msk [vmem:[%s3526_s11 + $0xe] sm:$0x1] %vm585_vm9, %v2438_v49  ;;  %2460 = vst.msk [vmem:[%s3526_s11 + $0x16] sm:$0x1] %vm585_vm9, %v2446_v2 }
 0x663   : > { %2462 = vst.msk [vmem:[%s3526_s11 + $0x26] sm:$0x1] %vm585_vm9, %v2431_v48 }
 0x664   : > { %v2449_v53 = vcombine.high %v2445_v50, %v2445_v50  ;;  %2461 = vst.msk [vmem:[%s3526_s11 + $0x1e] sm:$0x1] %vm585_vm9, %v2448_v52  ;;  %2463 = vst.msk [vmem:[%s3526_s11 + $0x2e] sm:$0x1] %vm585_vm9, %v2445_v50 }
 0x665   : > { %2464 = vst.msk [vmem:[%s3526_s11 + $0x36] sm:$0x1] %vm585_vm9, %v2447_v51 }
 0x666   : > { %2465 = vst.msk [vmem:[%s3526_s11 + $0x3e] sm:$0x1] %vm585_vm9, %v2449_v53 }
 0x71f   : > { %v2707_v54 = vpop.f32.mrf.mxu1 }
 0x720   : > { %v2708_v55 = vadd.f32 %v2707_v54, %v3509_v26 }
 0x721   : > { %v3150_v56 = vpop.f32.mrf.mxu1 }
 0x722   : > { %v2711_v57 = vmax.f32 %v2708_v55, 0.0 }
 0x724   : > { %v2713_v58 = vcombine.high %v2711_v57, %v2711_v57  ;;  %v2720_v0 = vrot.slane %v2711_v57, %v3513_v29 }
 0x726   : > { %v2727_v59 = vrot.slane %v2713_v58, %v3513_v29  ;;  %v2728_v60 = vcombine.high %v2720_v0, %v2720_v0  ;;  %v2736_v61 = vrot.slane %v2720_v0, %v3513_v29 }
 0x728   : > { %v2729_v62 = vcombine.high %v2727_v59, %v2727_v59  ;;  %v2743_v63 = vrot.slane %v2727_v59, %v3513_v29  ;;  %v2750_v26 = vrot.slane %v2728_v60, %v3513_v29  ;;  %v2758_v5 = vcombine.high %v2736_v61, %v2736_v61  ;;  %2770 = vst.msk [vmem:[%s3526_s11 + $0x7] sm:$0x1] %vm585_vm9, %v2736_v61 }
 0x72a   : > { %v2757_v6 = vrot.slane %v2729_v62, %v3513_v29  ;;  %v2759_v7 = vcombine.high %v2743_v63, %v2743_v63  ;;  %v2760_v3 = vcombine.high %v2750_v26, %v2750_v26  ;;  %2771 = vst.msk [vmem:[%s3526_s11 + $0xf] sm:$0x1] %vm585_vm9, %v2750_v26  ;;  %2772 = vst.msk [vmem:[%s3526_s11 + $0x17] sm:$0x1] %vm585_vm9, %v2758_v5 }
 0x72b   : > { %2774 = vst.msk [vmem:[%s3526_s11 + $0x27] sm:$0x1] %vm585_vm9, %v2743_v63 }
 0x72c   : > { %v2761_v29 = vcombine.high %v2757_v6, %v2757_v6  ;;  %2773 = vst.msk [vmem:[%s3526_s11 + $0x1f] sm:$0x1] %vm585_vm9, %v2760_v3  ;;  %2775 = vst.msk [vmem:[%s3526_s11 + $0x2f] sm:$0x1] %vm585_vm9, %v2757_v6 }
 0x72d   : > { %2776 = vst.msk [vmem:[%s3526_s11 + $0x37] sm:$0x1] %vm585_vm9, %v2759_v7 }
 0x72e   : > { %2777 = vst.msk [vmem:[%s3526_s11 + $0x3f] sm:$0x1] %vm585_vm9, %v2761_v29 }
 0x72f   : > { %3226 = shalt.err (!%p3223_p5)
}
 0x730   : > { %s3227_s29 = scalar_lea.hbm %s3887_s16, 1024  ;;  %s3231_s9 = scalar_lea.hbm %s3951_s5, 2048 }
 0x731   : > { %p3228_p6 = scmp.ne.s32.totalorder %s3887_s16, %s3227_s29  ;;  %p3232_p10 = scmp.lt.s32.totalorder %s3887_s16, %s3951_s5 }
 0x732   : > { %p3233_p11 = scmp.lt.s32.totalorder %s3231_s9, %s3227_s29 }
 0x733   : > { %p3229_p7 = pnand %p3228_p6, %p3368_p4 }
 0x734   : > { %p3234_p12 = por %p3233_p11, %p3232_p10 }
 0x735   : > { %p3230_p9 = pneg %p3229_p7 }
 0x737   : > { %p3235_p13 = pnand %p3234_p12, %p3230_p9 }
 0x739   : > { %3238 = shalt.err (!%p3235_p13)
}
 0x73a   : > { %s3296_s12 = smov 128   ;;  %s3297_s14 = smov 8  }
 0x73b   : > { %3151 = dma.vmem_to_hbm [thread:$0]  (%p3368_p4), %s3889_s13, 1024, %s3887_s16, %s3901_s21, %s3296_s12, %s3296_s12, %s3297_s14  }
 0x73c PF: > { %p3157_p0 = scmp.ge.s32.totalorder %s3289_s23, 2  ;;  %s2808_s15 = sand.u32 1, %s3269_s18  }
 0x73d   : > { %s2809_s17 = scalar_lea.sflag [#allocation3], %s2808_s15 }
 0x73e   : > { %p3154_p1 = pnand %p3157_p0, %p3375_p8 }
 0x740   : > { %p3155_p2 = pneg %p3154_p1 }
 0x742   : > { %3264 = dma.done.wait (%p3155_p2), %s2809_s17, 1024  }
 0x743   : > { %3266 = vsyncadd (%p3155_p2), %s2809_s17, 4294966272  ;;  %s18_s23 = sadd.s32 1, %s3289_s23   ;;  %s3954_s18 = smov %s3273_s19 }
 0x744   : > { %p15_p3 = scmp.ge.s32.totalorder %s18_s23, 4   ;;  %s3955_s19 = smov %s3277_s20 }
 0x745   : > { %s3956_s20 = smov %s3381_s6  ;;  %s3957_s21 = smov %s3285_s22 }
 0x746   : > { %s3958_s22 = smov %s3960_s26  ;;  %17 = sbr.rel (!%p15_p3) target bundleno = 4 (0x4), region = 75 }
 0x74b   :  { %2814 = vsyncpa [#allocation3], 1 }
 0x74c   :  { %2816 = vsyncpa [#allocation3 + $0x1], 1 }

</bundles_post_ra>
